<compile_context>
chip_gen: v7x
topology: tpu7x:2x2x1
jax: 0.10.0
libtpu: 0.0.40
codegen_flags: <defaults>
</compile_context>

<pallas_src>
import functools
import math

import jax
import jax.numpy as jnp
import numpy as np
from jax.experimental import pallas as pl
from jax.experimental.pallas import tpu as pltpu


# --------------------------------------------------------------------------- config
def _default_vmem_limit():
    """Explicit VMEM budget: <=100 MiB on v5e/v6e, ~48 MiB on v7x (64 MiB physical)."""
    try:
        cap = pltpu.get_tpu_info().vmem_capacity_bytes
        return int(min(100 * 2 ** 20, cap * 3 // 4))
    except Exception:
        return 48 * 2 ** 20


_VMEM_LIMIT = _default_vmem_limit()


def _cparams(*dims):
    return pltpu.CompilerParams(dimension_semantics=dims,
                                vmem_limit_bytes=_VMEM_LIMIT)


@functools.lru_cache(maxsize=None)
def _single_buffer_ok():
    """Probe once: does this jax build accept pipeline_mode=pl.Buffered(1)?  Constant
    weights never change across the grid, so double-buffering them only wastes VMEM
    (matters most on v7x's 64 MiB) and a second DMA."""
    try:
        def k(x_ref, w_ref, o_ref):
            o_ref[...] = x_ref[...] + w_ref[...]

        out = pl.pallas_call(
            k,
            out_shape=jax.ShapeDtypeStruct((16, 128), jnp.float32),
            grid=(2,),
            in_specs=[pl.BlockSpec((8, 128), lambda i: (i, 0)),
                      pl.BlockSpec((8, 128), lambda i: (0, 0),
                                   pipeline_mode=pl.Buffered(1))],
            out_specs=pl.BlockSpec((8, 128), lambda i: (i, 0)),
        )(jnp.zeros((16, 128), jnp.float32), jnp.ones((8, 128), jnp.float32))
        jax.block_until_ready(out)
        return True
    except Exception:
        return False


def _const_spec(arr):
    """Whole-array weight spec (index map constant across the grid); single-buffered
    when supported."""
    zeros = (0,) * arr.ndim
    if _single_buffer_ok():
        return pl.BlockSpec(arr.shape, lambda *_: zeros, pipeline_mode=pl.Buffered(1))
    return pl.BlockSpec(arr.shape, lambda *_: zeros)


# --------------------------------------------------------------------------- helpers
def _ln(x, g, b, eps=1e-5):
    m = jnp.mean(x, axis=-1, keepdims=True)
    v = jnp.mean((x - m) ** 2, axis=-1, keepdims=True)
    return (x - m) * jax.lax.rsqrt(v + eps) * g + b


def _pad_rows(x, before, after):
    """In-VMEM zero padding along the row (sublane) axis via concatenation."""
    parts = []
    if before:
        parts.append(jnp.zeros((before, x.shape[1]), x.dtype))
    parts.append(x)
    if after:
        parts.append(jnp.zeros((after, x.shape[1]), x.dtype))
    return jnp.concatenate(parts, axis=0) if len(parts) > 1 else x


def exponential_linspace_int(start, end, num):
    base = math.exp(math.log(end / start) / (num - 1))
    return [int(round(start * base ** i)) for i in range(num)]


# --------------------------------------------------------------------------- kernels
def _conv_epilogue(y, x, rw_ref, rb_ref, L, pool, pool_type, out_ref):
    # TODO(synk): torch nn.GELU defaults to exact erf; tanh approximation used here.
    y = jax.nn.gelu(y, approximate=True)
    y = y + jnp.dot(x.astype(jnp.bfloat16), rw_ref[...],
                    preferred_element_type=jnp.float32) + rb_ref[...]
    cout = y.shape[-1]
    yr = y.reshape(L // pool, pool, cout)
    red = jnp.max(yr, axis=1) if pool_type == "max" else jnp.mean(yr, axis=1)
    out_ref[0] = red.astype(out_ref.dtype)


def conv_im2col_kernel(x_ref, w_ref, b_ref, rw_ref, rb_ref, out_ref,
                       *, L, W, pad, pool, pool_type, remap):
    """Per-batch 1D 'same' conv as a single im2col matmul (small-channel path)."""
    x = x_ref[0].astype(jnp.float32)                          # (L, Cin)
    if remap:                                                 # fused `src == -2 -> -1`
        x = jnp.where(x == -2.0, jnp.float32(-1.0), x)
    xp = _pad_rows(x, pad, W - 1 - pad)
    xcol = jnp.concatenate([xp[t:t + L, :] for t in range(W)],
                           axis=-1).astype(jnp.bfloat16)      # (L, W*Cin)
    y = jnp.dot(xcol, w_ref[...], preferred_element_type=jnp.float32) + b_ref[...]
    _conv_epilogue(y, x, rw_ref, rb_ref, L, pool, pool_type, out_ref)


def conv_tap_kernel(x_ref, w_ref, b_ref, rw_ref, rb_ref, out_ref,
                    *, L, W, pad, pool, pool_type, G, remap):
    """Per-batch grouped 1D conv as W shifted-tap grouped contractions
    (no im2col concat, no wasted block-diagonal FLOPs).  Used when Cin/G >= 128."""
    x = x_ref[0].astype(jnp.float32)                          # (L, Cin)
    if remap:
        x = jnp.where(x == -2.0, jnp.float32(-1.0), x)
    cin = x.shape[-1]
    cin_g = cin // G
    cout_g = w_ref.shape[-1]
    xp = _pad_rows(x, pad, W - 1 - pad).astype(jnp.bfloat16)
    acc = jnp.zeros((L, G, cout_g), jnp.float32)
    for t in range(W):                                        # static, W is small
        xt = xp[t:t + L, :].reshape(L, G, cin_g)
        acc = acc + jnp.einsum("lgc,gco->lgo", xt, w_ref[t],
                               preferred_element_type=jnp.float32)
    y = acc.reshape(L, G * cout_g) + b_ref[...]
    _conv_epilogue(y, x, rw_ref, rb_ref, L, pool, pool_type, out_ref)


def fusion_kernel(s_ref, md_ref, w_ref, b_ref, g_ref, be_ref, out_ref):
    """x = LN(s @ w_s + md_term + bias); the metadata term is precomputed per row."""
    s = s_ref[0].astype(jnp.bfloat16)                         # (T, f2)
    y = jnp.dot(s, w_ref[...], preferred_element_type=jnp.float32)
    y = y + md_ref[0] + b_ref[...]
    out_ref[0] = _ln(y, g_ref[...], be_ref[...]).astype(out_ref.dtype)


def attn_ctx_kernel(x_ref, wqkv_ref, bqkv_ref, relb_ref, ctx_ref, *, Dh, scale):
    """Per-(batch, head) attention context.  Head-major weights / relative bias are
    tiled by the grid, so only one head's (T, T) scores are ever live in VMEM."""
    x = x_ref[0].astype(jnp.bfloat16)                         # (T, D)
    qkv = jnp.dot(x, wqkv_ref[0],
                  preferred_element_type=jnp.float32) + bqkv_ref[0]   # (T, 3*Dh)
    q = (qkv[:, :Dh] * scale).astype(jnp.bfloat16)
    k = qkv[:, Dh:2 * Dh].astype(jnp.bfloat16)
    v = qkv[:, 2 * Dh:].astype(jnp.bfloat16)
    s = jnp.einsum("td,sd->ts", q, k, preferred_element_type=jnp.float32)
    s = s + relb_ref[0].astype(jnp.float32)
    s = s - jnp.max(s, axis=-1, keepdims=True)
    p = jnp.exp(s)
    p = p * pl.reciprocal(jnp.sum(p, axis=-1, keepdims=True), approx=True)
    ctx = jnp.dot(p.astype(jnp.bfloat16), v, preferred_element_type=jnp.float32)
    ctx_ref[0, 0] = ctx.astype(ctx_ref.dtype)                 # (T, Dh)


def attn_ffn_kernel(x_ref, ctx_ref, wo_ref, bo_ref, g1_ref, be1_ref,
                    w1_ref, b1_ref, w2_ref, b2_ref, g2_ref, be2_ref, out_ref, *, H):
    """Output projection (single full-K matmul) + residual + LN + FFN + LN."""
    x = x_ref[0].astype(jnp.float32)                          # (T, D)
    ctx = ctx_ref[0]                                          # (H, T, Dh) bf16
    ctx_flat = jnp.concatenate([ctx[h] for h in range(H)], axis=-1)   # (T, D) bf16
    attn = jnp.dot(ctx_flat, wo_ref[...],
                   preferred_element_type=jnp.float32) + bo_ref[...]
    h1 = _ln(x + attn, g1_ref[...], be1_ref[...])
    ff = jax.nn.gelu(jnp.dot(h1.astype(jnp.bfloat16), w1_ref[...],
                             preferred_element_type=jnp.float32) + b1_ref[...],
                     approximate=True)
    ff = jnp.dot(ff.astype(jnp.bfloat16), w2_ref[...],
                 preferred_element_type=jnp.float32) + b2_ref[...]
    out_ref[0] = _ln(h1 + ff, g2_ref[...], be2_ref[...]).astype(out_ref.dtype)


def pool_proj_kernel(x_ref, wp_ref, bp_ref, w1_ref, b1_ref, w2_ref, b2_ref, out_ref):
    """Per-batch attention pooling over T + projection head (Linear-GELU-Linear)."""
    x = x_ref[0].astype(jnp.float32)                          # (T, D)
    scores = jnp.sum(x * wp_ref[...], axis=-1, keepdims=True) + bp_ref[...]   # (T, 1)
    scores = scores - jnp.max(scores, axis=0, keepdims=True)
    e = jnp.exp(scores)
    w = e / jnp.sum(e, axis=0, keepdims=True)                 # exact (parity)
    rep = jnp.sum(w * x, axis=0, keepdims=True)               # (1, D)
    h = jax.nn.gelu(jnp.dot(rep.astype(jnp.bfloat16), w1_ref[...],
                            preferred_element_type=jnp.float32) + b1_ref[...],
                    approximate=True)
    out_ref[0] = jnp.dot(h.astype(jnp.bfloat16), w2_ref[...],
                         preferred_element_type=jnp.float32) + b2_ref[...]


# --------------------------------------------------------------------------- wrappers
def conv_tower(x, p, pool_type, remap=False):
    B, L, cin = x.shape
    W, pool = p["W"], p["pool"]
    Lo = L // pool
    pad = (W - 1) // 2
    if p["mode"] == "tap":
        G = p["w"].shape[1]
        cout = G * p["w"].shape[3]
        kernel = functools.partial(conv_tap_kernel, L=L, W=W, pad=pad, pool=pool,
                                   pool_type=pool_type, G=G, remap=remap)
        w_main = p["w"]
    else:
        cout = p["w_col"].shape[1]
        kernel = functools.partial(conv_im2col_kernel, L=L, W=W, pad=pad, pool=pool,
                                   pool_type=pool_type, remap=remap)
        w_main = p["w_col"]
    weights = (w_main, p["b"], p["rw"], p["rb"])
    return pl.pallas_call(
        kernel,
        out_shape=jax.ShapeDtypeStruct((B, Lo, cout), jnp.bfloat16),
        grid=(B,),
        in_specs=[pl.BlockSpec((1, L, cin), lambda b: (b, 0, 0))]
                 + [_const_spec(w) for w in weights],
        out_specs=pl.BlockSpec((1, Lo, cout), lambda b: (b, 0, 0)),
        compiler_params=_cparams("parallel"),
    )(x, *weights)


def fusion(s, md_term, p):
    B, T, f2 = s.shape
    weights = (p["w_s"], p["b"], p["g"], p["be"])
    return pl.pallas_call(
        fusion_kernel,
        out_shape=jax.ShapeDtypeStruct((B, T, f2), jnp.bfloat16),
        grid=(B,),
        in_specs=[pl.BlockSpec((1, T, f2), lambda b: (b, 0, 0)),
                  pl.BlockSpec((1, 1, f2), lambda b: (b, 0, 0))]
                 + [_const_spec(w) for w in weights],
        out_specs=pl.BlockSpec((1, T, f2), lambda b: (b, 0, 0)),
        compiler_params=_cparams("parallel"),
    )(s, md_term, *weights)


def attn_block(x, p, nhead):
    B, T, D = x.shape
    Dh = D // nhead
    # --- per-(batch, head) context: both grid axes parallel (megacore-friendly) ---
    ctx = pl.pallas_call(
        functools.partial(attn_ctx_kernel, Dh=Dh, scale=1.0 / math.sqrt(Dh)),
        out_shape=jax.ShapeDtypeStruct((B, nhead, T, Dh), jnp.bfloat16),
        grid=(B, nhead),
        in_specs=[pl.BlockSpec((1, T, D), lambda b, h: (b, 0, 0)),
                  pl.BlockSpec((1, D, 3 * Dh), lambda b, h: (h, 0, 0)),
                  pl.BlockSpec((1, 1, 3 * Dh), lambda b, h: (h, 0, 0)),
                  pl.BlockSpec((1, T, T), lambda b, h: (h, 0, 0))],
        out_specs=pl.BlockSpec((1, 1, T, Dh), lambda b, h: (b, h, 0, 0)),
        compiler_params=_cparams("parallel", "parallel"),
    )(x, p["wqkv_h"], p["bqkv_h"], p["relb"])

    # --- output projection (full-K) + residual + LN + FFN + LN, per batch row ---
    weights = (p["wo"], p["bo"], p["g1"], p["be1"], p["w1"], p["b1"],
               p["w2"], p["b2"], p["g2"], p["be2"])
    return pl.pallas_call(
        functools.partial(attn_ffn_kernel, H=nhead),
        out_shape=jax.ShapeDtypeStruct((B, T, D), jnp.bfloat16),
        grid=(B,),
        in_specs=[pl.BlockSpec((1, T, D), lambda b: (b, 0, 0)),
                  pl.BlockSpec((1, nhead, T, Dh), lambda b: (b, 0, 0, 0))]
                 + [_const_spec(w) for w in weights],
        out_specs=pl.BlockSpec((1, T, D), lambda b: (b, 0, 0)),
        compiler_params=_cparams("parallel"),
    )(x, ctx, *weights)


def pool_proj(x, p):
    B, T, D = x.shape
    weights = (p["wp"], p["bp"], p["w1"], p["b1"], p["w2"], p["b2"])
    rep = pl.pallas_call(
        pool_proj_kernel,
        out_shape=jax.ShapeDtypeStruct((B, 1, D), jnp.float32),
        grid=(B,),
        in_specs=[pl.BlockSpec((1, T, D), lambda b: (b, 0, 0))]
                 + [_const_spec(w) for w in weights],
        out_specs=pl.BlockSpec((1, 1, D), lambda b: (b, 0, 0)),
        compiler_params=_cparams("parallel"),
    )(x, *weights)
    return rep.reshape(B, D)


# --------------------------------------------------------------------------- params
def init_params(key, *, f1, md_dim, W, n_cnn, nhead, n_sab, pool_size,
                context_length, expansion, include_dna_tower=False):
    l2 = context_length // pool_size ** n_cnn
    f2 = f1 * expansion ** n_cnn
    dh = f2 // nhead
    keys = iter(jax.random.split(key, 512))

    def rnd(shape, scale):
        return (scale * jax.random.normal(next(keys), shape)).astype(jnp.float32)

    def zeros(shape):
        return jnp.zeros(shape, jnp.float32)

    def ones(shape):
        return jnp.ones(shape, jnp.float32)

    def group_mask(cin, cout, groups):
        ci = np.arange(cin)[:, None] // (cin // groups)
        co = np.arange(cout)[None, :] // (cout // groups)
        return jnp.asarray((ci == co).astype(np.float32))

    # TODO(synk): for production configs, pad channel counts / l2 to multiples of
    # 128 / 8 so every conv & fusion store stays lane-dense and the MXU is fully fed.
    def conv_params(cin, cout, groups, pool):
        w = rnd((W, cin, cout), 1.0 / math.sqrt(W * cin))
        grouped = groups > 1 and cin % groups == 0 and cout % groups == 0
        if grouped:
            w = w * group_mask(cin, cout, groups)[None, :, :]
        base = dict(b=zeros((1, cout)),
                    rw=rnd((cin, cout), 1.0 / math.sqrt(cin)).astype(jnp.bfloat16),
                    rb=zeros((1, cout)), pool=pool, W=W)
        G = groups if grouped else 1
        per_in, per_out = cin // G, cout // G
        if per_in >= 128:
            # grouped shifted-tap contraction weight: (W, G, Cin/G, Cout/G)
            wg = jnp.stack([w[:, g * per_in:(g + 1) * per_in,
                              g * per_out:(g + 1) * per_out] for g in range(G)],
                           axis=1).astype(jnp.bfloat16)
            return dict(mode="tap", w=wg, **base)
        # TODO(synk): tiny per-group channels -> dense masked im2col matmul; this
        # wastes (G-1)/G of the MXU FLOPs but a per-group contraction would under-
        # fill the MXU even harder at these channel counts.
        return dict(mode="im2col",
                    w_col=w.reshape(W * cin, cout).astype(jnp.bfloat16), **base)

    # DNA conv tower (output never consumed by the reference forward)
    conv_dna = []
    if include_dna_tower:
        dna_ch = exponential_linspace_int(4, f2, n_cnn + 3)
        conv_dna = [conv_params(dna_ch[i], dna_ch[i + 1], 1,
                                5 if i >= n_cnn else pool_size)
                    for i in range(n_cnn + 2)]

    # signal conv tower (grouped, groups = f1)
    sig_ch = [f1 * expansion ** i for i in range(n_cnn)]
    conv_sig = []
    for i in range(n_cnn):
        cout = sig_ch[i + 1] if i + 1 < n_cnn else expansion * sig_ch[i]
        conv_sig.append(conv_params(sig_ch[i], cout, f1, pool_size))

    # metadata embedding + fusion (fusion weight split: signal part / metadata part)
    wmd = rnd((f1, md_dim), 1.0 / math.sqrt(f1))
    bmd = zeros((md_dim,))
    s_in = 1.0 / math.sqrt(f2 + md_dim)
    fusion_p = dict(w_s=rnd((f2, f2), s_in).astype(jnp.bfloat16),
                    w_md=rnd((md_dim, f2), s_in),            # tiny, applied in plain JAX
                    b=zeros((1, f2)), g=ones((1, f2)), be=zeros((1, f2)))

    # transformer blocks with relative-position attention bias (head-major layouts)
    def block_params():
        table = rnd((nhead, 2 * l2 - 1), 0.02)
        idx = np.arange(l2)[:, None] - np.arange(l2)[None, :] + (l2 - 1)
        relb = table[:, idx].astype(jnp.bfloat16)            # (H, T, T) bf16
        s = 1.0 / math.sqrt(f2)
        wq, wk, wv = rnd((f2, f2), s), rnd((f2, f2), s), rnd((f2, f2), s)
        wqkv_h = jnp.stack(
            [jnp.concatenate([wq[:, h * dh:(h + 1) * dh],
                              wk[:, h * dh:(h + 1) * dh],
                              wv[:, h * dh:(h + 1) * dh]], axis=1)
             for h in range(nhead)], axis=0).astype(jnp.bfloat16)   # (H, D, 3*Dh)
        return dict(wqkv_h=wqkv_h, bqkv_h=zeros((nhead, 1, 3 * dh)),
                    relb=relb,
                    wo=rnd((f2, f2), s).astype(jnp.bfloat16), bo=zeros((1, f2)),
                    g1=ones((1, f2)), be1=zeros((1, f2)),
                    w1=rnd((f2, 4 * f2), s).astype(jnp.bfloat16), b1=zeros((1, 4 * f2)),
                    w2=rnd((4 * f2, f2), 1.0 / math.sqrt(4 * f2)).astype(jnp.bfloat16),
                    b2=zeros((1, f2)),
                    g2=ones((1, f2)), be2=zeros((1, f2)))

    blocks = [block_params() for _ in range(n_sab)]

    # attention pooling + projection head
    head = dict(wp=rnd((1, f2), 1.0 / math.sqrt(f2)), bp=zeros((1, 1)),
                w1=rnd((f2, f2), 1.0 / math.sqrt(f2)).astype(jnp.bfloat16),
                b1=zeros((1, f2)),
                w2=rnd((f2, f2), 1.0 / math.sqrt(f2)).astype(jnp.bfloat16),
                b2=zeros((1, f2)))

    return dict(conv_dna=conv_dna, conv_sig=conv_sig, wmd=wmd, bmd=bmd,
                fusion=fusion_p, blocks=blocks, head=head, nhead=nhead)


# --------------------------------------------------------------------------- forward
def forward(params, src, seq, x_metadata, include_dna_tower=False):
    # metadata missing-value remap (-2 -> -1); the src remap is fused into conv layer 0
    x_metadata = jnp.where(x_metadata == -2.0, jnp.float32(-1.0), x_metadata)

    if seq.ndim == 2:
        seq = jnp.broadcast_to(seq[None], (src.shape[0],) + seq.shape)

    # DNA tower: its output is never consumed by the reference forward, so it is
    # skipped by default (dominant FLOP/HBM saving with identical output).
    if include_dna_tower and params["conv_dna"]:
        h = seq.astype(jnp.float32)
        for p in params["conv_dna"]:
            h = conv_tower(h, p, "max")
        del h

    # signal tower (remap fused into the first layer's kernel)
    s = src
    for i, p in enumerate(params["conv_sig"]):
        s = conv_tower(s, p, "avg", remap=(i == 0))

    # metadata embedding + metadata part of the fusion layer (tiny glue matmuls,
    # computed once per batch row; no (B,T,md) broadcast / concat is materialized)
    xmd = x_metadata @ params["wmd"] + params["bmd"]            # (B, md)
    md_term = (xmd @ params["fusion"]["w_md"])[:, None, :]      # (B, 1, f2)

    x = fusion(s, md_term, params["fusion"])
    for blk in params["blocks"]:
        x = attn_block(x, blk, params["nhead"])
    rep = pool_proj(x, params["head"])                          # pooling + projection head
    return rep


# --------------------------------------------------------------------------- main
if __name__ == "__main__":
    B = 2
    f1, md_dim, W = 4, 8, 3
    n_cnn, nhead, n_sab = 2, 2, 1
    pool_size, context_length, expansion = 2, 16, 2
    l2 = context_length // pool_size ** n_cnn          # 4
    f2 = f1 * expansion ** n_cnn                       # 16
    L_dna = context_length * 25                        # 400

    # probe Buffered(1) support once, eagerly, before tracing the model
    _single_buffer_ok()

    key = jax.random.PRNGKey(0)
    k_src, k_seq, k_md, k_par = jax.random.split(key, 4)

    src = jax.random.normal(k_src, (B, context_length, f1), jnp.float32)
    src = src.at[0, 0, 0].set(-2.0)                    # exercise the == -2 remap
    nt = jax.random.randint(k_seq, (B, L_dna), 0, 4)
    seq = jax.nn.one_hot(nt, 4, dtype=jnp.float32)
    x_metadata = jax.random.normal(k_md, (B, f1), jnp.float32)
    x_metadata = x_metadata.at[1, 2].set(-2.0)

    params = init_params(k_par, f1=f1, md_dim=md_dim, W=W, n_cnn=n_cnn,
                         nhead=nhead, n_sab=n_sab, pool_size=pool_size,
                         context_length=context_length, expansion=expansion,
                         include_dna_tower=False)

    fwd = jax.jit(lambda a, b, c: forward(params, a, b, c))
    out = fwd(src, seq, x_metadata)
    jax.block_until_ready(out)
    assert out.shape == (B, f2) and bool(jnp.all(jnp.isfinite(out)))
    print("KERNEL_OK")
</pallas_src>

<mosaic_0001>
module attributes {stable_mosaic.version = 11 : i64} {
  func.func @k(%arg0: i32, %arg1: memref<8x128xf32, #tpu.memory_space<vmem>>, %arg2: memref<8x128xf32, #tpu.memory_space<vmem>>, %arg3: memref<8x128xf32, #tpu.memory_space<vmem>>) attributes {dimension_semantics = [#tpu.dimension_semantics<arbitrary>], iteration_bounds = array<i64: 2>, scalar_prefetch = 0 : i64, scratch_operands = 0 : i64, tpu.core_type = #tpu.core_type<tc>, window_params = [{transform_indices = @transform_0, window_bounds = array<i64: 8, 128>}, {pipeline_mode = #tpu.pipeline_mode<synchronous>, transform_indices = @transform_1, window_bounds = array<i64: 8, 128>}, {transform_indices = @transform_2, window_bounds = array<i64: 8, 128>}]} {
    %c0 = arith.constant 0 : index
    %c0_0 = arith.constant 0 : index
    %0 = vector.load %arg1[%c0, %c0_0] : memref<8x128xf32, #tpu.memory_space<vmem>>, vector<8x128xf32>
    %c0_1 = arith.constant 0 : index
    %c0_2 = arith.constant 0 : index
    %1 = vector.load %arg2[%c0_1, %c0_2] : memref<8x128xf32, #tpu.memory_space<vmem>>, vector<8x128xf32>
    %2 = arith.addf %0, %1 : vector<8x128xf32>
    %c0_3 = arith.constant 0 : index
    %c0_4 = arith.constant 0 : index
    %3 = vector.load %arg3[%c0_3, %c0_4] : memref<8x128xf32, #tpu.memory_space<vmem>>, vector<8x128xf32>
    tpu.vector_store %arg3[%c0_3, %c0_4], %2 {strides = array<i32>} : memref<8x128xf32, #tpu.memory_space<vmem>>, vector<8x128xf32>,
    return
  }
  func.func @transform_0(%arg0: i32) -> (i32, i32) {
    %c0_i32 = arith.constant 0 : i32
    %c0_i32_0 = arith.constant 0 : i32
    return %arg0, %c0_i32 : i32, i32
  }
  func.func @transform_1(%arg0: i32) -> (i32, i32) {
    %c0_i32 = arith.constant 0 : i32
    %c0_i32_0 = arith.constant 0 : i32
    %c0_i32_1 = arith.constant 0 : i32
    return %c0_i32, %c0_i32_0 : i32, i32
  }
  func.func @transform_2(%arg0: i32) -> (i32, i32) {
    %c0_i32 = arith.constant 0 : i32
    %c0_i32_0 = arith.constant 0 : i32
    return %arg0, %c0_i32 : i32, i32
  }
}

module attributes {stable_mosaic.version = 11 : i64} {
  func.func @attn_ctx_kernel(%arg0: i32, %arg1: i32, %arg2: memref<1x4x16xbf16, #tpu.memory_space<vmem>>, %arg3: memref<1x16x24xbf16, #tpu.memory_space<vmem>>, %arg4: memref<1x1x24xf32, #tpu.memory_space<vmem>>, %arg5: memref<1x4x4xbf16, #tpu.memory_space<vmem>>, %arg6: memref<1x1x4x8xbf16, #tpu.memory_space<vmem>>) attributes {dimension_semantics = [#tpu.dimension_semantics<parallel>, #tpu.dimension_semantics<parallel>], iteration_bounds = array<i64: 2, 2>, scalar_prefetch = 0 : i64, scratch_operands = 0 : i64, tpu.core_type = #tpu.core_type<tc>, window_params = [{transform_indices = @transform_0, window_bounds = array<i64: 1, 4, 16>}, {transform_indices = @transform_1, window_bounds = array<i64: 1, 16, 24>}, {transform_indices = @transform_2, window_bounds = array<i64: 1, 1, 24>}, {transform_indices = @transform_3, window_bounds = array<i64: 1, 4, 4>}, {transform_indices = @transform_4, window_bounds = array<i64: 1, 1, 4, 8>}]} {
    %c0 = arith.constant 0 : index
    %c0_0 = arith.constant 0 : index
    %c0_1 = arith.constant 0 : index
    %0 = vector.load %arg2[%c0, %c0_0, %c0_1] : memref<1x4x16xbf16, #tpu.memory_space<vmem>>, vector<1x4x16xbf16>
    %1 = vector.shape_cast %0 : vector<1x4x16xbf16> to vector<4x16xbf16>
    %c0_2 = arith.constant 0 : index
    %c0_3 = arith.constant 0 : index
    %c0_4 = arith.constant 0 : index
    %2 = vector.load %arg3[%c0_2, %c0_3, %c0_4] : memref<1x16x24xbf16, #tpu.memory_space<vmem>>, vector<1x16x24xbf16>
    %3 = vector.shape_cast %2 : vector<1x16x24xbf16> to vector<16x24xbf16>
    %cst = arith.constant dense<0.000000e+00> : vector<4x24xf32>
    %4 = tpu.matmul %1, %3, %cst {dimension_numbers = #tpu.dot_dimension_numbers<[1], [0], [0], [1], [0, 0, 1, 1], [], []>} : vector<4x16xbf16>, vector<16x24xbf16>, vector<4x24xf32> -> vector<4x24xf32>
    %c0_5 = arith.constant 0 : index
    %c0_6 = arith.constant 0 : index
    %c0_7 = arith.constant 0 : index
    %5 = vector.load %arg4[%c0_5, %c0_6, %c0_7] : memref<1x1x24xf32, #tpu.memory_space<vmem>>, vector<1x1x24xf32>
    %6 = vector.shape_cast %5 : vector<1x1x24xf32> to vector<1x24xf32>
    %7 = vector.broadcast %6 : vector<1x24xf32> to vector<4x24xf32>
    %8 = arith.addf %4, %7 : vector<4x24xf32>
    %9 = vector.extract_strided_slice %8 {offsets = [0, 0], sizes = [4, 8], strides = [1, 1]} : vector<4x24xf32> to vector<4x8xf32>
    %cst_8 = arith.constant 0.353553385 : f32
    %10 = vector.broadcast %cst_8 : f32 to vector<4x8xf32>
    %11 = arith.mulf %9, %10 : vector<4x8xf32>
    %12 = arith.truncf %11 : vector<4x8xf32> to vector<4x8xbf16>
    %13 = vector.extract_strided_slice %8 {offsets = [0, 8], sizes = [4, 8], strides = [1, 1]} : vector<4x24xf32> to vector<4x8xf32>
    %14 = arith.truncf %13 : vector<4x8xf32> to vector<4x8xbf16>
    %15 = vector.extract_strided_slice %8 {offsets = [0, 16], sizes = [4, 8], strides = [1, 1]} : vector<4x24xf32> to vector<4x8xf32>
    %16 = arith.truncf %15 : vector<4x8xf32> to vector<4x8xbf16>
    "tpu.trace_start"() <{level = 10 : i32, message = "td,sd->ts"}> : () -> ()
    %cst_9 = arith.constant dense<0.000000e+00> : vector<4x4xf32>
    %17 = tpu.matmul %12, %14, %cst_9 {dimension_numbers = #tpu.dot_dimension_numbers<[1], [1], [0], [0], [0, 0, 1, 0], [], []>} : vector<4x8xbf16>, vector<4x8xbf16>, vector<4x4xf32> -> vector<4x4xf32>
    "tpu.trace_stop"() : () -> ()
    %c0_10 = arith.constant 0 : index
    %c0_11 = arith.constant 0 : index
    %c0_12 = arith.constant 0 : index
    %18 = vector.load %arg5[%c0_10, %c0_11, %c0_12] : memref<1x4x4xbf16, #tpu.memory_space<vmem>>, vector<1x4x4xbf16>
    %19 = vector.shape_cast %18 : vector<1x4x4xbf16> to vector<4x4xbf16>
    %20 = arith.extf %19 : vector<4x4xbf16> to vector<4x4xf32>
    %21 = arith.addf %17, %20 : vector<4x4xf32>
    %cst_13 = arith.constant dense<0xFF800000> : vector<4xf32>
    %22 = vector.multi_reduction <maximumf>, %21, %cst_13 [1] : vector<4x4xf32> to vector<4xf32>
    %23 = vector.shape_cast %22 : vector<4xf32> to vector<4x1xf32>
    %24 = vector.broadcast %23 : vector<4x1xf32> to vector<4x4xf32>
    %25 = arith.subf %21, %24 : vector<4x4xf32>
    %26 = math.exp %25 : vector<4x4xf32>
    %cst_14 = arith.constant dense<0.000000e+00> : vector<4xf32>
    %27 = vector.multi_reduction <add>, %26, %cst_14 [1] : vector<4x4xf32> to vector<4xf32>
    %28 = vector.shape_cast %27 : vector<4xf32> to vector<4x1xf32>
    %29 = tpu.reciprocal %28 {approx = true} : vector<4x1xf32> -> vector<4x1xf32>
    %30 = vector.broadcast %29 : vector<4x1xf32> to vector<4x4xf32>
    %31 = arith.mulf %26, %30 : vector<4x4xf32>
    %32 = arith.truncf %31 : vector<4x4xf32> to vector<4x4xbf16>
    %cst_15 = arith.constant dense<0.000000e+00> : vector<4x8xf32>
    %33 = tpu.matmul %32, %16, %cst_15 {dimension_numbers = #tpu.dot_dimension_numbers<[1], [0], [0], [1], [0, 0, 1, 1], [], []>} : vector<4x4xbf16>, vector<4x8xbf16>, vector<4x8xf32> -> vector<4x8xf32>
    %34 = arith.truncf %33 : vector<4x8xf32> to vector<4x8xbf16>
    %c0_16 = arith.constant 0 : index
    %c0_17 = arith.constant 0 : index
    %c0_18 = arith.constant 0 : index
    %c0_19 = arith.constant 0 : index
    %35 = vector.load %arg6[%c0_16, %c0_17, %c0_18, %c0_19] : memref<1x1x4x8xbf16, #tpu.memory_space<vmem>>, vector<1x1x4x8xbf16>
    %36 = vector.shape_cast %35 : vector<1x1x4x8xbf16> to vector<4x8xbf16>
    %37 = vector.shape_cast %34 : vector<4x8xbf16> to vector<1x1x4x8xbf16>
    tpu.vector_store %arg6[%c0_16, %c0_17, %c0_18, %c0_19], %37 {strides = array<i32>} : memref<1x1x4x8xbf16, #tpu.memory_space<vmem>>, vector<1x1x4x8xbf16>,
    return
  }
  func.func @transform_0(%arg0: i32, %arg1: i32) -> (i32, i32, i32) {
    %c0_i32 = arith.constant 0 : i32
    %c0_i32_0 = arith.constant 0 : i32
    %c0_i32_1 = arith.constant 0 : i32
    return %arg0, %c0_i32, %c0_i32_0 : i32, i32, i32
  }
  func.func @transform_1(%arg0: i32, %arg1: i32) -> (i32, i32, i32) {
    %c0_i32 = arith.constant 0 : i32
    %c0_i32_0 = arith.constant 0 : i32
    %c0_i32_1 = arith.constant 0 : i32
    return %arg1, %c0_i32, %c0_i32_0 : i32, i32, i32
  }
  func.func @transform_2(%arg0: i32, %arg1: i32) -> (i32, i32, i32) {
    %c0_i32 = arith.constant 0 : i32
    %c0_i32_0 = arith.constant 0 : i32
    %c0_i32_1 = arith.constant 0 : i32
    return %arg1, %c0_i32, %c0_i32_0 : i32, i32, i32
  }
  func.func @transform_3(%arg0: i32, %arg1: i32) -> (i32, i32, i32) {
    %c0_i32 = arith.constant 0 : i32
    %c0_i32_0 = arith.constant 0 : i32
    %c0_i32_1 = arith.constant 0 : i32
    return %arg1, %c0_i32, %c0_i32_0 : i32, i32, i32
  }
  func.func @transform_4(%arg0: i32, %arg1: i32) -> (i32, i32, i32, i32) {
    %c0_i32 = arith.constant 0 : i32
    %c0_i32_0 = arith.constant 0 : i32
    %c0_i32_1 = arith.constant 0 : i32
    return %arg0, %arg1, %c0_i32, %c0_i32_0 : i32, i32, i32, i32
  }
}

module attributes {stable_mosaic.version = 11 : i64} {
  func.func @conv_im2col_kernel(%arg0: i32, %arg1: memref<1x16x4xf32, #tpu.memory_space<vmem>>, %arg2: memref<12x8xbf16, #tpu.memory_space<vmem>>, %arg3: memref<1x8xf32, #tpu.memory_space<vmem>>, %arg4: memref<4x8xbf16, #tpu.memory_space<vmem>>, %arg5: memref<1x8xf32, #tpu.memory_space<vmem>>, %arg6: memref<1x8x8xbf16, #tpu.memory_space<vmem>>) attributes {dimension_semantics = [#tpu.dimension_semantics<parallel>], iteration_bounds = array<i64: 2>, scalar_prefetch = 0 : i64, scratch_operands = 0 : i64, tpu.core_type = #tpu.core_type<tc>, window_params = [{transform_indices = @transform_0, window_bounds = array<i64: 1, 16, 4>}, {pipeline_mode = #tpu.pipeline_mode<synchronous>, transform_indices = @transform_1, window_bounds = array<i64: 12, 8>}, {pipeline_mode = #tpu.pipeline_mode<synchronous>, transform_indices = @transform_2, window_bounds = array<i64: 1, 8>}, {pipeline_mode = #tpu.pipeline_mode<synchronous>, transform_indices = @transform_3, window_bounds = array<i64: 4, 8>}, {pipeline_mode = #tpu.pipeline_mode<synchronous>, transform_indices = @transform_4, window_bounds = array<i64: 1, 8>}, {transform_indices = @transform_5, window_bounds = array<i64: 1, 8, 8>}]} {
    %c0 = arith.constant 0 : index
    %c0_0 = arith.constant 0 : index
    %c0_1 = arith.constant 0 : index
    %0 = vector.load %arg1[%c0, %c0_0, %c0_1] : memref<1x16x4xf32, #tpu.memory_space<vmem>>, vector<1x16x4xf32>
    %1 = vector.shape_cast %0 : vector<1x16x4xf32> to vector<16x4xf32>
    %cst = arith.constant -2.000000e+00 : f32
    %2 = vector.broadcast %cst : f32 to vector<16x4xf32>
    %3 = arith.cmpf oeq, %1, %2 : vector<16x4xf32>
    %cst_2 = arith.constant -1.000000e+00 : f32
    %4 = vector.broadcast %cst_2 : f32 to vector<16x4xf32>
    %5 = arith.select %3, %4, %1 : vector<16x4xi1>, vector<16x4xf32>
    %cst_3 = arith.constant 0.000000e+00 : f32
    %6 = vector.broadcast %cst_3 : f32 to vector<1x4xf32>
    %cst_4 = arith.constant 0.000000e+00 : f32
    %7 = vector.broadcast %cst_4 : f32 to vector<1x4xf32>
    %8 = tpu.concatenate %6, %5, %7 in 0 : vector<1x4xf32>, vector<16x4xf32>, vector<1x4xf32> -> vector<18x4xf32>
    %9 = vector.extract_strided_slice %8 {offsets = [0, 0], sizes = [16, 4], strides = [1, 1]} : vector<18x4xf32> to vector<16x4xf32>
    %10 = vector.extract_strided_slice %8 {offsets = [1, 0], sizes = [16, 4], strides = [1, 1]} : vector<18x4xf32> to vector<16x4xf32>
    %11 = vector.extract_strided_slice %8 {offsets = [2, 0], sizes = [16, 4], strides = [1, 1]} : vector<18x4xf32> to vector<16x4xf32>
    %12 = tpu.concatenate %9, %10, %11 in 1 : vector<16x4xf32>, vector<16x4xf32>, vector<16x4xf32> -> vector<16x12xf32>
    %13 = arith.truncf %12 : vector<16x12xf32> to vector<16x12xbf16>
    %c0_5 = arith.constant 0 : index
    %c0_6 = arith.constant 0 : index
    %14 = vector.load %arg2[%c0_5, %c0_6] : memref<12x8xbf16, #tpu.memory_space<vmem>>, vector<12x8xbf16>
    %cst_7 = arith.constant dense<0.000000e+00> : vector<16x8xf32>
    %15 = tpu.matmul %13, %14, %cst_7 {dimension_numbers = #tpu.dot_dimension_numbers<[1], [0], [0], [1], [0, 0, 1, 1], [], []>} : vector<16x12xbf16>, vector<12x8xbf16>, vector<16x8xf32> -> vector<16x8xf32>
    %c0_8 = arith.constant 0 : index
    %c0_9 = arith.constant 0 : index
    %16 = vector.load %arg3[%c0_8, %c0_9] : memref<1x8xf32, #tpu.memory_space<vmem>>, vector<1x8xf32>
    %17 = vector.broadcast %16 : vector<1x8xf32> to vector<16x8xf32>
    %18 = arith.addf %15, %17 : vector<16x8xf32>
    %19 = arith.mulf %18, %18 : vector<16x8xf32>
    %20 = arith.mulf %18, %19 : vector<16x8xf32>
    %cst_10 = arith.constant 4.471500e-02 : f32
    %21 = vector.broadcast %cst_10 : f32 to vector<16x8xf32>
    %22 = arith.mulf %21, %20 : vector<16x8xf32>
    %23 = arith.addf %18, %22 : vector<16x8xf32>
    %cst_11 = arith.constant 0.797884583 : f32
    %24 = vector.broadcast %cst_11 : f32 to vector<16x8xf32>
    %25 = arith.mulf %24, %23 : vector<16x8xf32>
    %26 = math.tanh %25 : vector<16x8xf32>
    %cst_12 = arith.constant 1.000000e+00 : f32
    %27 = vector.broadcast %cst_12 : f32 to vector<16x8xf32>
    %28 = arith.addf %27, %26 : vector<16x8xf32>
    %cst_13 = arith.constant 5.000000e-01 : f32
    %29 = vector.broadcast %cst_13 : f32 to vector<16x8xf32>
    %30 = arith.mulf %29, %28 : vector<16x8xf32>
    %31 = arith.mulf %18, %30 : vector<16x8xf32>
    %32 = arith.truncf %5 : vector<16x4xf32> to vector<16x4xbf16>
    %c0_14 = arith.constant 0 : index
    %c0_15 = arith.constant 0 : index
    %33 = vector.load %arg4[%c0_14, %c0_15] : memref<4x8xbf16, #tpu.memory_space<vmem>>, vector<4x8xbf16>
    %cst_16 = arith.constant dense<0.000000e+00> : vector<16x8xf32>
    %34 = tpu.matmul %32, %33, %cst_16 {dimension_numbers = #tpu.dot_dimension_numbers<[1], [0], [0], [1], [0, 0, 1, 1], [], []>} : vector<16x4xbf16>, vector<4x8xbf16>, vector<16x8xf32> -> vector<16x8xf32>
    %35 = arith.addf %31, %34 : vector<16x8xf32>
    %c0_17 = arith.constant 0 : index
    %c0_18 = arith.constant 0 : index
    %36 = vector.load %arg5[%c0_17, %c0_18] : memref<1x8xf32, #tpu.memory_space<vmem>>, vector<1x8xf32>
    %37 = vector.broadcast %36 : vector<1x8xf32> to vector<16x8xf32>
    %38 = arith.addf %35, %37 : vector<16x8xf32>
    %39 = vector.shape_cast %38 : vector<16x8xf32> to vector<8x2x8xf32>
    %cst_19 = arith.constant dense<0.000000e+00> : vector<8x8xf32>
    %40 = vector.multi_reduction <add>, %39, %cst_19 [1] : vector<8x2x8xf32> to vector<8x8xf32>
    %cst_20 = arith.constant 2.000000e+00 : f32
    %41 = vector.broadcast %cst_20 : f32 to vector<8x8xf32>
    %42 = arith.divf %40, %41 : vector<8x8xf32>
    %43 = arith.truncf %42 : vector<8x8xf32> to vector<8x8xbf16>
    %c0_21 = arith.constant 0 : index
    %c0_22 = arith.constant 0 : index
    %c0_23 = arith.constant 0 : index
    %44 = vector.load %arg6[%c0_21, %c0_22, %c0_23] : memref<1x8x8xbf16, #tpu.memory_space<vmem>>, vector<1x8x8xbf16>
    %45 = vector.shape_cast %44 : vector<1x8x8xbf16> to vector<8x8xbf16>
    %46 = vector.shape_cast %43 : vector<8x8xbf16> to vector<1x8x8xbf16>
    tpu.vector_store %arg6[%c0_21, %c0_22, %c0_23], %46 {strides = array<i32>} : memref<1x8x8xbf16, #tpu.memory_space<vmem>>, vector<1x8x8xbf16>,
    return
  }
  func.func @transform_0(%arg0: i32) -> (i32, i32, i32) {
    %c0_i32 = arith.constant 0 : i32
    %c0_i32_0 = arith.constant 0 : i32
    %c0_i32_1 = arith.constant 0 : i32
    return %arg0, %c0_i32, %c0_i32_0 : i32, i32, i32
  }
  func.func @transform_1(%arg0: i32) -> (i32, i32) {
    %c0_i32 = arith.constant 0 : i32
    %c0_i32_0 = arith.constant 0 : i32
    %c0_i32_1 = arith.constant 0 : i32
    return %c0_i32, %c0_i32_0 : i32, i32
  }
  func.func @transform_2(%arg0: i32) -> (i32, i32) {
    %c0_i32 = arith.constant 0 : i32
    %c0_i32_0 = arith.constant 0 : i32
    %c0_i32_1 = arith.constant 0 : i32
    return %c0_i32, %c0_i32_0 : i32, i32
  }
  func.func @transform_3(%arg0: i32) -> (i32, i32) {
    %c0_i32 = arith.constant 0 : i32
    %c0_i32_0 = arith.constant 0 : i32
    %c0_i32_1 = arith.constant 0 : i32
    return %c0_i32, %c0_i32_0 : i32, i32
  }
  func.func @transform_4(%arg0: i32) -> (i32, i32) {
    %c0_i32 = arith.constant 0 : i32
    %c0_i32_0 = arith.constant 0 : i32
    %c0_i32_1 = arith.constant 0 : i32
    return %c0_i32, %c0_i32_0 : i32, i32
  }
  func.func @transform_5(%arg0: i32) -> (i32, i32, i32) {
    %c0_i32 = arith.constant 0 : i32
    %c0_i32_0 = arith.constant 0 : i32
    %c0_i32_1 = arith.constant 0 : i32
    return %arg0, %c0_i32, %c0_i32_0 : i32, i32, i32
  }
}

module attributes {stable_mosaic.version = 11 : i64} {
  func.func @conv_im2col_kernel(%arg0: i32, %arg1: memref<1x8x8xbf16, #tpu.memory_space<vmem>>, %arg2: memref<24x16xbf16, #tpu.memory_space<vmem>>, %arg3: memref<1x16xf32, #tpu.memory_space<vmem>>, %arg4: memref<8x16xbf16, #tpu.memory_space<vmem>>, %arg5: memref<1x16xf32, #tpu.memory_space<vmem>>, %arg6: memref<1x4x16xbf16, #tpu.memory_space<vmem>>) attributes {dimension_semantics = [#tpu.dimension_semantics<parallel>], iteration_bounds = array<i64: 2>, scalar_prefetch = 0 : i64, scratch_operands = 0 : i64, tpu.core_type = #tpu.core_type<tc>, window_params = [{transform_indices = @transform_0, window_bounds = array<i64: 1, 8, 8>}, {pipeline_mode = #tpu.pipeline_mode<synchronous>, transform_indices = @transform_1, window_bounds = array<i64: 24, 16>}, {pipeline_mode = #tpu.pipeline_mode<synchronous>, transform_indices = @transform_2, window_bounds = array<i64: 1, 16>}, {pipeline_mode = #tpu.pipeline_mode<synchronous>, transform_indices = @transform_3, window_bounds = array<i64: 8, 16>}, {pipeline_mode = #tpu.pipeline_mode<synchronous>, transform_indices = @transform_4, window_bounds = array<i64: 1, 16>}, {transform_indices = @transform_5, window_bounds = array<i64: 1, 4, 16>}]} {
    %c0 = arith.constant 0 : index
    %c0_0 = arith.constant 0 : index
    %c0_1 = arith.constant 0 : index
    %0 = vector.load %arg1[%c0, %c0_0, %c0_1] : memref<1x8x8xbf16, #tpu.memory_space<vmem>>, vector<1x8x8xbf16>
    %1 = vector.shape_cast %0 : vector<1x8x8xbf16> to vector<8x8xbf16>
    %2 = arith.extf %1 : vector<8x8xbf16> to vector<8x8xf32>
    %cst = arith.constant 0.000000e+00 : f32
    %3 = vector.broadcast %cst : f32 to vector<1x8xf32>
    %cst_2 = arith.constant 0.000000e+00 : f32
    %4 = vector.broadcast %cst_2 : f32 to vector<1x8xf32>
    %5 = tpu.concatenate %3, %2, %4 in 0 : vector<1x8xf32>, vector<8x8xf32>, vector<1x8xf32> -> vector<10x8xf32>
    %6 = vector.extract_strided_slice %5 {offsets = [0, 0], sizes = [8, 8], strides = [1, 1]} : vector<10x8xf32> to vector<8x8xf32>
    %7 = vector.extract_strided_slice %5 {offsets = [1, 0], sizes = [8, 8], strides = [1, 1]} : vector<10x8xf32> to vector<8x8xf32>
    %8 = vector.extract_strided_slice %5 {offsets = [2, 0], sizes = [8, 8], strides = [1, 1]} : vector<10x8xf32> to vector<8x8xf32>
    %9 = tpu.concatenate %6, %7, %8 in 1 : vector<8x8xf32>, vector<8x8xf32>, vector<8x8xf32> -> vector<8x24xf32>
    %10 = arith.truncf %9 : vector<8x24xf32> to vector<8x24xbf16>
    %c0_3 = arith.constant 0 : index
    %c0_4 = arith.constant 0 : index
    %11 = vector.load %arg2[%c0_3, %c0_4] : memref<24x16xbf16, #tpu.memory_space<vmem>>, vector<24x16xbf16>
    %cst_5 = arith.constant dense<0.000000e+00> : vector<8x16xf32>
    %12 = tpu.matmul %10, %11, %cst_5 {dimension_numbers = #tpu.dot_dimension_numbers<[1], [0], [0], [1], [0, 0, 1, 1], [], []>} : vector<8x24xbf16>, vector<24x16xbf16>, vector<8x16xf32> -> vector<8x16xf32>
    %c0_6 = arith.constant 0 : index
    %c0_7 = arith.constant 0 : index
    %13 = vector.load %arg3[%c0_6, %c0_7] : memref<1x16xf32, #tpu.memory_space<vmem>>, vector<1x16xf32>
    %14 = vector.broadcast %13 : vector<1x16xf32> to vector<8x16xf32>
    %15 = arith.addf %12, %14 : vector<8x16xf32>
    %16 = arith.mulf %15, %15 : vector<8x16xf32>
    %17 = arith.mulf %15, %16 : vector<8x16xf32>
    %cst_8 = arith.constant 4.471500e-02 : f32
    %18 = vector.broadcast %cst_8 : f32 to vector<8x16xf32>
    %19 = arith.mulf %18, %17 : vector<8x16xf32>
    %20 = arith.addf %15, %19 : vector<8x16xf32>
    %cst_9 = arith.constant 0.797884583 : f32
    %21 = vector.broadcast %cst_9 : f32 to vector<8x16xf32>
    %22 = arith.mulf %21, %20 : vector<8x16xf32>
    %23 = math.tanh %22 : vector<8x16xf32>
    %cst_10 = arith.constant 1.000000e+00 : f32
    %24 = vector.broadcast %cst_10 : f32 to vector<8x16xf32>
    %25 = arith.addf %24, %23 : vector<8x16xf32>
    %cst_11 = arith.constant 5.000000e-01 : f32
    %26 = vector.broadcast %cst_11 : f32 to vector<8x16xf32>
    %27 = arith.mulf %26, %25 : vector<8x16xf32>
    %28 = arith.mulf %15, %27 : vector<8x16xf32>
    %29 = arith.truncf %2 : vector<8x8xf32> to vector<8x8xbf16>
    %c0_12 = arith.constant 0 : index
    %c0_13 = arith.constant 0 : index
    %30 = vector.load %arg4[%c0_12, %c0_13] : memref<8x16xbf16, #tpu.memory_space<vmem>>, vector<8x16xbf16>
    %cst_14 = arith.constant dense<0.000000e+00> : vector<8x16xf32>
    %31 = tpu.matmul %29, %30, %cst_14 {dimension_numbers = #tpu.dot_dimension_numbers<[1], [0], [0], [1], [0, 0, 1, 1], [], []>} : vector<8x8xbf16>, vector<8x16xbf16>, vector<8x16xf32> -> vector<8x16xf32>
    %32 = arith.addf %28, %31 : vector<8x16xf32>
    %c0_15 = arith.constant 0 : index
    %c0_16 = arith.constant 0 : index
    %33 = vector.load %arg5[%c0_15, %c0_16] : memref<1x16xf32, #tpu.memory_space<vmem>>, vector<1x16xf32>
    %34 = vector.broadcast %33 : vector<1x16xf32> to vector<8x16xf32>
    %35 = arith.addf %32, %34 : vector<8x16xf32>
    %36 = vector.shape_cast %35 : vector<8x16xf32> to vector<4x2x16xf32>
    %cst_17 = arith.constant dense<0.000000e+00> : vector<4x16xf32>
    %37 = vector.multi_reduction <add>, %36, %cst_17 [1] : vector<4x2x16xf32> to vector<4x16xf32>
    %cst_18 = arith.constant 2.000000e+00 : f32
    %38 = vector.broadcast %cst_18 : f32 to vector<4x16xf32>
    %39 = arith.divf %37, %38 : vector<4x16xf32>
    %40 = arith.truncf %39 : vector<4x16xf32> to vector<4x16xbf16>
    %c0_19 = arith.constant 0 : index
    %c0_20 = arith.constant 0 : index
    %c0_21 = arith.constant 0 : index
    %41 = vector.load %arg6[%c0_19, %c0_20, %c0_21] : memref<1x4x16xbf16, #tpu.memory_space<vmem>>, vector<1x4x16xbf16>
    %42 = vector.shape_cast %41 : vector<1x4x16xbf16> to vector<4x16xbf16>
    %43 = vector.shape_cast %40 : vector<4x16xbf16> to vector<1x4x16xbf16>
    tpu.vector_store %arg6[%c0_19, %c0_20, %c0_21], %43 {strides = array<i32>} : memref<1x4x16xbf16, #tpu.memory_space<vmem>>, vector<1x4x16xbf16>,
    return
  }
  func.func @transform_0(%arg0: i32) -> (i32, i32, i32) {
    %c0_i32 = arith.constant 0 : i32
    %c0_i32_0 = arith.constant 0 : i32
    %c0_i32_1 = arith.constant 0 : i32
    return %arg0, %c0_i32, %c0_i32_0 : i32, i32, i32
  }
  func.func @transform_1(%arg0: i32) -> (i32, i32) {
    %c0_i32 = arith.constant 0 : i32
    %c0_i32_0 = arith.constant 0 : i32
    %c0_i32_1 = arith.constant 0 : i32
    return %c0_i32, %c0_i32_0 : i32, i32
  }
  func.func @transform_2(%arg0: i32) -> (i32, i32) {
    %c0_i32 = arith.constant 0 : i32
    %c0_i32_0 = arith.constant 0 : i32
    %c0_i32_1 = arith.constant 0 : i32
    return %c0_i32, %c0_i32_0 : i32, i32
  }
  func.func @transform_3(%arg0: i32) -> (i32, i32) {
    %c0_i32 = arith.constant 0 : i32
    %c0_i32_0 = arith.constant 0 : i32
    %c0_i32_1 = arith.constant 0 : i32
    return %c0_i32, %c0_i32_0 : i32, i32
  }
  func.func @transform_4(%arg0: i32) -> (i32, i32) {
    %c0_i32 = arith.constant 0 : i32
    %c0_i32_0 = arith.constant 0 : i32
    %c0_i32_1 = arith.constant 0 : i32
    return %c0_i32, %c0_i32_0 : i32, i32
  }
  func.func @transform_5(%arg0: i32) -> (i32, i32, i32) {
    %c0_i32 = arith.constant 0 : i32
    %c0_i32_0 = arith.constant 0 : i32
    %c0_i32_1 = arith.constant 0 : i32
    return %arg0, %c0_i32, %c0_i32_0 : i32, i32, i32
  }
}

module attributes {stable_mosaic.version = 11 : i64} {
  func.func @fusion_kernel(%arg0: i32, %arg1: memref<1x4x16xbf16, #tpu.memory_space<vmem>>, %arg2: memref<1x1x16xf32, #tpu.memory_space<vmem>>, %arg3: memref<16x16xbf16, #tpu.memory_space<vmem>>, %arg4: memref<1x16xf32, #tpu.memory_space<vmem>>, %arg5: memref<1x16xf32, #tpu.memory_space<vmem>>, %arg6: memref<1x16xf32, #tpu.memory_space<vmem>>, %arg7: memref<1x4x16xbf16, #tpu.memory_space<vmem>>) attributes {dimension_semantics = [#tpu.dimension_semantics<parallel>], iteration_bounds = array<i64: 2>, scalar_prefetch = 0 : i64, scratch_operands = 0 : i64, tpu.core_type = #tpu.core_type<tc>, window_params = [{transform_indices = @transform_0, window_bounds = array<i64: 1, 4, 16>}, {transform_indices = @transform_1, window_bounds = array<i64: 1, 1, 16>}, {pipeline_mode = #tpu.pipeline_mode<synchronous>, transform_indices = @transform_2, window_bounds = array<i64: 16, 16>}, {pipeline_mode = #tpu.pipeline_mode<synchronous>, transform_indices = @transform_3, window_bounds = array<i64: 1, 16>}, {pipeline_mode = #tpu.pipeline_mode<synchronous>, transform_indices = @transform_4, window_bounds = array<i64: 1, 16>}, {pipeline_mode = #tpu.pipeline_mode<synchronous>, transform_indices = @transform_5, window_bounds = array<i64: 1, 16>}, {transform_indices = @transform_6, window_bounds = array<i64: 1, 4, 16>}]} {
    %c0 = arith.constant 0 : index
    %c0_0 = arith.constant 0 : index
    %c0_1 = arith.constant 0 : index
    %0 = vector.load %arg1[%c0, %c0_0, %c0_1] : memref<1x4x16xbf16, #tpu.memory_space<vmem>>, vector<1x4x16xbf16>
    %1 = vector.shape_cast %0 : vector<1x4x16xbf16> to vector<4x16xbf16>
    %c0_2 = arith.constant 0 : index
    %c0_3 = arith.constant 0 : index
    %2 = vector.load %arg3[%c0_2, %c0_3] : memref<16x16xbf16, #tpu.memory_space<vmem>>, vector<16x16xbf16>
    %cst = arith.constant dense<0.000000e+00> : vector<4x16xf32>
    %3 = tpu.matmul %1, %2, %cst {dimension_numbers = #tpu.dot_dimension_numbers<[1], [0], [0], [1], [0, 0, 1, 1], [], []>} : vector<4x16xbf16>, vector<16x16xbf16>, vector<4x16xf32> -> vector<4x16xf32>
    %c0_4 = arith.constant 0 : index
    %c0_5 = arith.constant 0 : index
    %c0_6 = arith.constant 0 : index
    %4 = vector.load %arg2[%c0_4, %c0_5, %c0_6] : memref<1x1x16xf32, #tpu.memory_space<vmem>>, vector<1x1x16xf32>
    %5 = vector.shape_cast %4 : vector<1x1x16xf32> to vector<1x16xf32>
    %6 = vector.broadcast %5 : vector<1x16xf32> to vector<4x16xf32>
    %7 = arith.addf %3, %6 : vector<4x16xf32>
    %c0_7 = arith.constant 0 : index
    %c0_8 = arith.constant 0 : index
    %8 = vector.load %arg4[%c0_7, %c0_8] : memref<1x16xf32, #tpu.memory_space<vmem>>, vector<1x16xf32>
    %9 = vector.broadcast %8 : vector<1x16xf32> to vector<4x16xf32>
    %10 = arith.addf %7, %9 : vector<4x16xf32>
    %c0_9 = arith.constant 0 : index
    %c0_10 = arith.constant 0 : index
    %11 = vector.load %arg5[%c0_9, %c0_10] : memref<1x16xf32, #tpu.memory_space<vmem>>, vector<1x16xf32>
    %c0_11 = arith.constant 0 : index
    %c0_12 = arith.constant 0 : index
    %12 = vector.load %arg6[%c0_11, %c0_12] : memref<1x16xf32, #tpu.memory_space<vmem>>, vector<1x16xf32>
    %cst_13 = arith.constant dense<0.000000e+00> : vector<4xf32>
    %13 = vector.multi_reduction <add>, %10, %cst_13 [1] : vector<4x16xf32> to vector<4xf32>
    %14 = vector.shape_cast %13 : vector<4xf32> to vector<4x1xf32>
    %cst_14 = arith.constant 1.600000e+01 : f32
    %15 = vector.broadcast %cst_14 : f32 to vector<4x1xf32>
    %16 = arith.divf %14, %15 : vector<4x1xf32>
    %17 = vector.broadcast %16 : vector<4x1xf32> to vector<4x16xf32>
    %18 = arith.subf %10, %17 : vector<4x16xf32>
    %19 = arith.mulf %18, %18 : vector<4x16xf32>
    %cst_15 = arith.constant dense<0.000000e+00> : vector<4xf32>
    %20 = vector.multi_reduction <add>, %19, %cst_15 [1] : vector<4x16xf32> to vector<4xf32>
    %21 = vector.shape_cast %20 : vector<4xf32> to vector<4x1xf32>
    %cst_16 = arith.constant 1.600000e+01 : f32
    %22 = vector.broadcast %cst_16 : f32 to vector<4x1xf32>
    %23 = arith.divf %21, %22 : vector<4x1xf32>
    %24 = vector.broadcast %16 : vector<4x1xf32> to vector<4x16xf32>
    %25 = arith.subf %10, %24 : vector<4x16xf32>
    %cst_17 = arith.constant 9.99999974E-6 : f32
    %26 = vector.broadcast %cst_17 : f32 to vector<4x1xf32>
    %27 = arith.addf %23, %26 : vector<4x1xf32>
    %28 = math.rsqrt %27 : vector<4x1xf32>
    %29 = vector.broadcast %28 : vector<4x1xf32> to vector<4x16xf32>
    %30 = arith.mulf %25, %29 : vector<4x16xf32>
    %31 = vector.broadcast %11 : vector<1x16xf32> to vector<4x16xf32>
    %32 = arith.mulf %30, %31 : vector<4x16xf32>
    %33 = vector.broadcast %12 : vector<1x16xf32> to vector<4x16xf32>
    %34 = arith.addf %32, %33 : vector<4x16xf32>
    %35 = arith.truncf %34 : vector<4x16xf32> to vector<4x16xbf16>
    %c0_18 = arith.constant 0 : index
    %c0_19 = arith.constant 0 : index
    %c0_20 = arith.constant 0 : index
    %36 = vector.load %arg7[%c0_18, %c0_19, %c0_20] : memref<1x4x16xbf16, #tpu.memory_space<vmem>>, vector<1x4x16xbf16>
    %37 = vector.shape_cast %36 : vector<1x4x16xbf16> to vector<4x16xbf16>
    %38 = vector.shape_cast %35 : vector<4x16xbf16> to vector<1x4x16xbf16>
    tpu.vector_store %arg7[%c0_18, %c0_19, %c0_20], %38 {strides = array<i32>} : memref<1x4x16xbf16, #tpu.memory_space<vmem>>, vector<1x4x16xbf16>,
    return
  }
  func.func @transform_0(%arg0: i32) -> (i32, i32, i32) {
    %c0_i32 = arith.constant 0 : i32
    %c0_i32_0 = arith.constant 0 : i32
    %c0_i32_1 = arith.constant 0 : i32
    return %arg0, %c0_i32, %c0_i32_0 : i32, i32, i32
  }
  func.func @transform_1(%arg0: i32) -> (i32, i32, i32) {
    %c0_i32 = arith.constant 0 : i32
    %c0_i32_0 = arith.constant 0 : i32
    %c0_i32_1 = arith.constant 0 : i32
    return %arg0, %c0_i32, %c0_i32_0 : i32, i32, i32
  }
  func.func @transform_2(%arg0: i32) -> (i32, i32) {
    %c0_i32 = arith.constant 0 : i32
    %c0_i32_0 = arith.constant 0 : i32
    %c0_i32_1 = arith.constant 0 : i32
    return %c0_i32, %c0_i32_0 : i32, i32
  }
  func.func @transform_3(%arg0: i32) -> (i32, i32) {
    %c0_i32 = arith.constant 0 : i32
    %c0_i32_0 = arith.constant 0 : i32
    %c0_i32_1 = arith.constant 0 : i32
    return %c0_i32, %c0_i32_0 : i32, i32
  }
  func.func @transform_4(%arg0: i32) -> (i32, i32) {
    %c0_i32 = arith.constant 0 : i32
    %c0_i32_0 = arith.constant 0 : i32
    %c0_i32_1 = arith.constant 0 : i32
    return %c0_i32, %c0_i32_0 : i32, i32
  }
  func.func @transform_5(%arg0: i32) -> (i32, i32) {
    %c0_i32 = arith.constant 0 : i32
    %c0_i32_0 = arith.constant 0 : i32
    %c0_i32_1 = arith.constant 0 : i32
    return %c0_i32, %c0_i32_0 : i32, i32
  }
  func.func @transform_6(%arg0: i32) -> (i32, i32, i32) {
    %c0_i32 = arith.constant 0 : i32
    %c0_i32_0 = arith.constant 0 : i32
    %c0_i32_1 = arith.constant 0 : i32
    return %arg0, %c0_i32, %c0_i32_0 : i32, i32, i32
  }
}

module attributes {stable_mosaic.version = 11 : i64} {
  func.func @attn_ffn_kernel(%arg0: i32, %arg1: memref<1x4x16xbf16, #tpu.memory_space<vmem>>, %arg2: memref<1x2x4x8xbf16, #tpu.memory_space<vmem>>, %arg3: memref<16x16xbf16, #tpu.memory_space<vmem>>, %arg4: memref<1x16xf32, #tpu.memory_space<vmem>>, %arg5: memref<1x16xf32, #tpu.memory_space<vmem>>, %arg6: memref<1x16xf32, #tpu.memory_space<vmem>>, %arg7: memref<16x64xbf16, #tpu.memory_space<vmem>>, %arg8: memref<1x64xf32, #tpu.memory_space<vmem>>, %arg9: memref<64x16xbf16, #tpu.memory_space<vmem>>, %arg10: memref<1x16xf32, #tpu.memory_space<vmem>>, %arg11: memref<1x16xf32, #tpu.memory_space<vmem>>, %arg12: memref<1x16xf32, #tpu.memory_space<vmem>>, %arg13: memref<1x4x16xbf16, #tpu.memory_space<vmem>>) attributes {dimension_semantics = [#tpu.dimension_semantics<parallel>], iteration_bounds = array<i64: 2>, scalar_prefetch = 0 : i64, scratch_operands = 0 : i64, tpu.core_type = #tpu.core_type<tc>, window_params = [{transform_indices = @transform_0, window_bounds = array<i64: 1, 4, 16>}, {transform_indices = @transform_1, window_bounds = array<i64: 1, 2, 4, 8>}, {pipeline_mode = #tpu.pipeline_mode<synchronous>, transform_indices = @transform_2, window_bounds = array<i64: 16, 16>}, {pipeline_mode = #tpu.pipeline_mode<synchronous>, transform_indices = @transform_3, window_bounds = array<i64: 1, 16>}, {pipeline_mode = #tpu.pipeline_mode<synchronous>, transform_indices = @transform_4, window_bounds = array<i64: 1, 16>}, {pipeline_mode = #tpu.pipeline_mode<synchronous>, transform_indices = @transform_5, window_bounds = array<i64: 1, 16>}, {pipeline_mode = #tpu.pipeline_mode<synchronous>, transform_indices = @transform_6, window_bounds = array<i64: 16, 64>}, {pipeline_mode = #tpu.pipeline_mode<synchronous>, transform_indices = @transform_7, window_bounds = array<i64: 1, 64>}, {pipeline_mode = #tpu.pipeline_mode<synchronous>, transform_indices = @transform_8, window_bounds = array<i64: 64, 16>}, {pipeline_mode = #tpu.pipeline_mode<synchronous>, transform_indices = @transform_9, window_bounds = array<i64: 1, 16>}, {pipeline_mode = #tpu.pipeline_mode<synchronous>, transform_indices = @transform_10, window_bounds = array<i64: 1, 16>}, {pipeline_mode = #tpu.pipeline_mode<synchronous>, transform_indices = @transform_11, window_bounds = array<i64: 1, 16>}, {transform_indices = @transform_12, window_bounds = array<i64: 1, 4, 16>}]} {
    %c0 = arith.constant 0 : index
    %c0_0 = arith.constant 0 : index
    %c0_1 = arith.constant 0 : index
    %0 = vector.load %arg1[%c0, %c0_0, %c0_1] : memref<1x4x16xbf16, #tpu.memory_space<vmem>>, vector<1x4x16xbf16>
    %1 = vector.shape_cast %0 : vector<1x4x16xbf16> to vector<4x16xbf16>
    %2 = arith.extf %1 : vector<4x16xbf16> to vector<4x16xf32>
    %c0_2 = arith.constant 0 : index
    %c0_3 = arith.constant 0 : index
    %c0_4 = arith.constant 0 : index
    %c0_5 = arith.constant 0 : index
    %3 = vector.load %arg2[%c0_2, %c0_3, %c0_4, %c0_5] : memref<1x2x4x8xbf16, #tpu.memory_space<vmem>>, vector<1x2x4x8xbf16>
    %4 = vector.shape_cast %3 : vector<1x2x4x8xbf16> to vector<2x4x8xbf16>
    %5 = vector.extract_strided_slice %4 {offsets = [0, 0, 0], sizes = [1, 4, 8], strides = [1, 1, 1]} : vector<2x4x8xbf16> to vector<1x4x8xbf16>
    %6 = vector.shape_cast %5 : vector<1x4x8xbf16> to vector<4x8xbf16>
    %7 = vector.extract_strided_slice %4 {offsets = [1, 0, 0], sizes = [1, 4, 8], strides = [1, 1, 1]} : vector<2x4x8xbf16> to vector<1x4x8xbf16>
    %8 = vector.shape_cast %7 : vector<1x4x8xbf16> to vector<4x8xbf16>
    %9 = tpu.concatenate %6, %8 in 1 : vector<4x8xbf16>, vector<4x8xbf16> -> vector<4x16xbf16>
    %c0_6 = arith.constant 0 : index
    %c0_7 = arith.constant 0 : index
    %10 = vector.load %arg3[%c0_6, %c0_7] : memref<16x16xbf16, #tpu.memory_space<vmem>>, vector<16x16xbf16>
    %cst = arith.constant dense<0.000000e+00> : vector<4x16xf32>
    %11 = tpu.matmul %9, %10, %cst {dimension_numbers = #tpu.dot_dimension_numbers<[1], [0], [0], [1], [0, 0, 1, 1], [], []>} : vector<4x16xbf16>, vector<16x16xbf16>, vector<4x16xf32> -> vector<4x16xf32>
    %c0_8 = arith.constant 0 : index
    %c0_9 = arith.constant 0 : index
    %12 = vector.load %arg4[%c0_8, %c0_9] : memref<1x16xf32, #tpu.memory_space<vmem>>, vector<1x16xf32>
    %13 = vector.broadcast %12 : vector<1x16xf32> to vector<4x16xf32>
    %14 = arith.addf %11, %13 : vector<4x16xf32>
    %15 = arith.addf %2, %14 : vector<4x16xf32>
    %c0_10 = arith.constant 0 : index
    %c0_11 = arith.constant 0 : index
    %16 = vector.load %arg5[%c0_10, %c0_11] : memref<1x16xf32, #tpu.memory_space<vmem>>, vector<1x16xf32>
    %c0_12 = arith.constant 0 : index
    %c0_13 = arith.constant 0 : index
    %17 = vector.load %arg6[%c0_12, %c0_13] : memref<1x16xf32, #tpu.memory_space<vmem>>, vector<1x16xf32>
    %cst_14 = arith.constant dense<0.000000e+00> : vector<4xf32>
    %18 = vector.multi_reduction <add>, %15, %cst_14 [1] : vector<4x16xf32> to vector<4xf32>
    %19 = vector.shape_cast %18 : vector<4xf32> to vector<4x1xf32>
    %cst_15 = arith.constant 1.600000e+01 : f32
    %20 = vector.broadcast %cst_15 : f32 to vector<4x1xf32>
    %21 = arith.divf %19, %20 : vector<4x1xf32>
    %22 = vector.broadcast %21 : vector<4x1xf32> to vector<4x16xf32>
    %23 = arith.subf %15, %22 : vector<4x16xf32>
    %24 = arith.mulf %23, %23 : vector<4x16xf32>
    %cst_16 = arith.constant dense<0.000000e+00> : vector<4xf32>
    %25 = vector.multi_reduction <add>, %24, %cst_16 [1] : vector<4x16xf32> to vector<4xf32>
    %26 = vector.shape_cast %25 : vector<4xf32> to vector<4x1xf32>
    %cst_17 = arith.constant 1.600000e+01 : f32
    %27 = vector.broadcast %cst_17 : f32 to vector<4x1xf32>
    %28 = arith.divf %26, %27 : vector<4x1xf32>
    %29 = vector.broadcast %21 : vector<4x1xf32> to vector<4x16xf32>
    %30 = arith.subf %15, %29 : vector<4x16xf32>
    %cst_18 = arith.constant 9.99999974E-6 : f32
    %31 = vector.broadcast %cst_18 : f32 to vector<4x1xf32>
    %32 = arith.addf %28, %31 : vector<4x1xf32>
    %33 = math.rsqrt %32 : vector<4x1xf32>
    %34 = vector.broadcast %33 : vector<4x1xf32> to vector<4x16xf32>
    %35 = arith.mulf %30, %34 : vector<4x16xf32>
    %36 = vector.broadcast %16 : vector<1x16xf32> to vector<4x16xf32>
    %37 = arith.mulf %35, %36 : vector<4x16xf32>
    %38 = vector.broadcast %17 : vector<1x16xf32> to vector<4x16xf32>
    %39 = arith.addf %37, %38 : vector<4x16xf32>
    %40 = arith.truncf %39 : vector<4x16xf32> to vector<4x16xbf16>
    %c0_19 = arith.constant 0 : index
    %c0_20 = arith.constant 0 : index
    %41 = vector.load %arg7[%c0_19, %c0_20] : memref<16x64xbf16, #tpu.memory_space<vmem>>, vector<16x64xbf16>
    %cst_21 = arith.constant dense<0.000000e+00> : vector<4x64xf32>
    %42 = tpu.matmul %40, %41, %cst_21 {dimension_numbers = #tpu.dot_dimension_numbers<[1], [0], [0], [1], [0, 0, 1, 1], [], []>} : vector<4x16xbf16>, vector<16x64xbf16>, vector<4x64xf32> -> vector<4x64xf32>
    %c0_22 = arith.constant 0 : index
    %c0_23 = arith.constant 0 : index
    %43 = vector.load %arg8[%c0_22, %c0_23] : memref<1x64xf32, #tpu.memory_space<vmem>>, vector<1x64xf32>
    %44 = vector.broadcast %43 : vector<1x64xf32> to vector<4x64xf32>
    %45 = arith.addf %42, %44 : vector<4x64xf32>
    %46 = arith.mulf %45, %45 : vector<4x64xf32>
    %47 = arith.mulf %45, %46 : vector<4x64xf32>
    %cst_24 = arith.constant 4.471500e-02 : f32
    %48 = vector.broadcast %cst_24 : f32 to vector<4x64xf32>
    %49 = arith.mulf %48, %47 : vector<4x64xf32>
    %50 = arith.addf %45, %49 : vector<4x64xf32>
    %cst_25 = arith.constant 0.797884583 : f32
    %51 = vector.broadcast %cst_25 : f32 to vector<4x64xf32>
    %52 = arith.mulf %51, %50 : vector<4x64xf32>
    %53 = math.tanh %52 : vector<4x64xf32>
    %cst_26 = arith.constant 1.000000e+00 : f32
    %54 = vector.broadcast %cst_26 : f32 to vector<4x64xf32>
    %55 = arith.addf %54, %53 : vector<4x64xf32>
    %cst_27 = arith.constant 5.000000e-01 : f32
    %56 = vector.broadcast %cst_27 : f32 to vector<4x64xf32>
    %57 = arith.mulf %56, %55 : vector<4x64xf32>
    %58 = arith.mulf %45, %57 : vector<4x64xf32>
    %59 = arith.truncf %58 : vector<4x64xf32> to vector<4x64xbf16>
    %c0_28 = arith.constant 0 : index
    %c0_29 = arith.constant 0 : index
    %60 = vector.load %arg9[%c0_28, %c0_29] : memref<64x16xbf16, #tpu.memory_space<vmem>>, vector<64x16xbf16>
    %cst_30 = arith.constant dense<0.000000e+00> : vector<4x16xf32>
    %61 = tpu.matmul %59, %60, %cst_30 {dimension_numbers = #tpu.dot_dimension_numbers<[1], [0], [0], [1], [0, 0, 1, 1], [], []>} : vector<4x64xbf16>, vector<64x16xbf16>, vector<4x16xf32> -> vector<4x16xf32>
    %c0_31 = arith.constant 0 : index
    %c0_32 = arith.constant 0 : index
    %62 = vector.load %arg10[%c0_31, %c0_32] : memref<1x16xf32, #tpu.memory_space<vmem>>, vector<1x16xf32>
    %63 = vector.broadcast %62 : vector<1x16xf32> to vector<4x16xf32>
    %64 = arith.addf %61, %63 : vector<4x16xf32>
    %65 = arith.addf %39, %64 : vector<4x16xf32>
    %c0_33 = arith.constant 0 : index
    %c0_34 = arith.constant 0 : index
    %66 = vector.load %arg11[%c0_33, %c0_34] : memref<1x16xf32, #tpu.memory_space<vmem>>, vector<1x16xf32>
    %c0_35 = arith.constant 0 : index
    %c0_36 = arith.constant 0 : index
    %67 = vector.load %arg12[%c0_35, %c0_36] : memref<1x16xf32, #tpu.memory_space<vmem>>, vector<1x16xf32>
    %cst_37 = arith.constant dense<0.000000e+00> : vector<4xf32>
    %68 = vector.multi_reduction <add>, %65, %cst_37 [1] : vector<4x16xf32> to vector<4xf32>
    %69 = vector.shape_cast %68 : vector<4xf32> to vector<4x1xf32>
    %cst_38 = arith.constant 1.600000e+01 : f32
    %70 = vector.broadcast %cst_38 : f32 to vector<4x1xf32>
    %71 = arith.divf %69, %70 : vector<4x1xf32>
    %72 = vector.broadcast %71 : vector<4x1xf32> to vector<4x16xf32>
    %73 = arith.subf %65, %72 : vector<4x16xf32>
    %74 = arith.mulf %73, %73 : vector<4x16xf32>
    %cst_39 = arith.constant dense<0.000000e+00> : vector<4xf32>
    %75 = vector.multi_reduction <add>, %74, %cst_39 [1] : vector<4x16xf32> to vector<4xf32>
    %76 = vector.shape_cast %75 : vector<4xf32> to vector<4x1xf32>
    %cst_40 = arith.constant 1.600000e+01 : f32
    %77 = vector.broadcast %cst_40 : f32 to vector<4x1xf32>
    %78 = arith.divf %76, %77 : vector<4x1xf32>
    %79 = vector.broadcast %71 : vector<4x1xf32> to vector<4x16xf32>
    %80 = arith.subf %65, %79 : vector<4x16xf32>
    %cst_41 = arith.constant 9.99999974E-6 : f32
    %81 = vector.broadcast %cst_41 : f32 to vector<4x1xf32>
    %82 = arith.addf %78, %81 : vector<4x1xf32>
    %83 = math.rsqrt %82 : vector<4x1xf32>
    %84 = vector.broadcast %83 : vector<4x1xf32> to vector<4x16xf32>
    %85 = arith.mulf %80, %84 : vector<4x16xf32>
    %86 = vector.broadcast %66 : vector<1x16xf32> to vector<4x16xf32>
    %87 = arith.mulf %85, %86 : vector<4x16xf32>
    %88 = vector.broadcast %67 : vector<1x16xf32> to vector<4x16xf32>
    %89 = arith.addf %87, %88 : vector<4x16xf32>
    %90 = arith.truncf %89 : vector<4x16xf32> to vector<4x16xbf16>
    %c0_42 = arith.constant 0 : index
    %c0_43 = arith.constant 0 : index
    %c0_44 = arith.constant 0 : index
    %91 = vector.load %arg13[%c0_42, %c0_43, %c0_44] : memref<1x4x16xbf16, #tpu.memory_space<vmem>>, vector<1x4x16xbf16>
    %92 = vector.shape_cast %91 : vector<1x4x16xbf16> to vector<4x16xbf16>
    %93 = vector.shape_cast %90 : vector<4x16xbf16> to vector<1x4x16xbf16>
    tpu.vector_store %arg13[%c0_42, %c0_43, %c0_44], %93 {strides = array<i32>} : memref<1x4x16xbf16, #tpu.memory_space<vmem>>, vector<1x4x16xbf16>,
    return
  }
  func.func @transform_0(%arg0: i32) -> (i32, i32, i32) {
    %c0_i32 = arith.constant 0 : i32
    %c0_i32_0 = arith.constant 0 : i32
    %c0_i32_1 = arith.constant 0 : i32
    return %arg0, %c0_i32, %c0_i32_0 : i32, i32, i32
  }
  func.func @transform_1(%arg0: i32) -> (i32, i32, i32, i32) {
    %c0_i32 = arith.constant 0 : i32
    %c0_i32_0 = arith.constant 0 : i32
    %c0_i32_1 = arith.constant 0 : i32
    %c0_i32_2 = arith.constant 0 : i32
    return %arg0, %c0_i32, %c0_i32_0, %c0_i32_1 : i32, i32, i32, i32
  }
  func.func @transform_2(%arg0: i32) -> (i32, i32) {
    %c0_i32 = arith.constant 0 : i32
    %c0_i32_0 = arith.constant 0 : i32
    %c0_i32_1 = arith.constant 0 : i32
    return %c0_i32, %c0_i32_0 : i32, i32
  }
  func.func @transform_3(%arg0: i32) -> (i32, i32) {
    %c0_i32 = arith.constant 0 : i32
    %c0_i32_0 = arith.constant 0 : i32
    %c0_i32_1 = arith.constant 0 : i32
    return %c0_i32, %c0_i32_0 : i32, i32
  }
  func.func @transform_4(%arg0: i32) -> (i32, i32) {
    %c0_i32 = arith.constant 0 : i32
    %c0_i32_0 = arith.constant 0 : i32
    %c0_i32_1 = arith.constant 0 : i32
    return %c0_i32, %c0_i32_0 : i32, i32
  }
  func.func @transform_5(%arg0: i32) -> (i32, i32) {
    %c0_i32 = arith.constant 0 : i32
    %c0_i32_0 = arith.constant 0 : i32
    %c0_i32_1 = arith.constant 0 : i32
    return %c0_i32, %c0_i32_0 : i32, i32
  }
  func.func @transform_6(%arg0: i32) -> (i32, i32) {
    %c0_i32 = arith.constant 0 : i32
    %c0_i32_0 = arith.constant 0 : i32
    %c0_i32_1 = arith.constant 0 : i32
    return %c0_i32, %c0_i32_0 : i32, i32
  }
  func.func @transform_7(%arg0: i32) -> (i32, i32) {
    %c0_i32 = arith.constant 0 : i32
    %c0_i32_0 = arith.constant 0 : i32
    %c0_i32_1 = arith.constant 0 : i32
    return %c0_i32, %c0_i32_0 : i32, i32
  }
  func.func @transform_8(%arg0: i32) -> (i32, i32) {
    %c0_i32 = arith.constant 0 : i32
    %c0_i32_0 = arith.constant 0 : i32
    %c0_i32_1 = arith.constant 0 : i32
    return %c0_i32, %c0_i32_0 : i32, i32
  }
  func.func @transform_9(%arg0: i32) -> (i32, i32) {
    %c0_i32 = arith.constant 0 : i32
    %c0_i32_0 = arith.constant 0 : i32
    %c0_i32_1 = arith.constant 0 : i32
    return %c0_i32, %c0_i32_0 : i32, i32
  }
  func.func @transform_10(%arg0: i32) -> (i32, i32) {
    %c0_i32 = arith.constant 0 : i32
    %c0_i32_0 = arith.constant 0 : i32
    %c0_i32_1 = arith.constant 0 : i32
    return %c0_i32, %c0_i32_0 : i32, i32
  }
  func.func @transform_11(%arg0: i32) -> (i32, i32) {
    %c0_i32 = arith.constant 0 : i32
    %c0_i32_0 = arith.constant 0 : i32
    %c0_i32_1 = arith.constant 0 : i32
    return %c0_i32, %c0_i32_0 : i32, i32
  }
  func.func @transform_12(%arg0: i32) -> (i32, i32, i32) {
    %c0_i32 = arith.constant 0 : i32
    %c0_i32_0 = arith.constant 0 : i32
    %c0_i32_1 = arith.constant 0 : i32
    return %arg0, %c0_i32, %c0_i32_0 : i32, i32, i32
  }
}

module attributes {stable_mosaic.version = 11 : i64} {
  func.func @pool_proj_kernel(%arg0: i32, %arg1: memref<1x4x16xbf16, #tpu.memory_space<vmem>>, %arg2: memref<1x16xf32, #tpu.memory_space<vmem>>, %arg3: memref<1x1xf32, #tpu.memory_space<vmem>>, %arg4: memref<16x16xbf16, #tpu.memory_space<vmem>>, %arg5: memref<1x16xf32, #tpu.memory_space<vmem>>, %arg6: memref<16x16xbf16, #tpu.memory_space<vmem>>, %arg7: memref<1x16xf32, #tpu.memory_space<vmem>>, %arg8: memref<1x1x16xf32, #tpu.memory_space<vmem>>) attributes {dimension_semantics = [#tpu.dimension_semantics<parallel>], iteration_bounds = array<i64: 2>, scalar_prefetch = 0 : i64, scratch_operands = 0 : i64, tpu.core_type = #tpu.core_type<tc>, window_params = [{transform_indices = @transform_0, window_bounds = array<i64: 1, 4, 16>}, {pipeline_mode = #tpu.pipeline_mode<synchronous>, transform_indices = @transform_1, window_bounds = array<i64: 1, 16>}, {pipeline_mode = #tpu.pipeline_mode<synchronous>, transform_indices = @transform_2, window_bounds = array<i64: 1, 1>}, {pipeline_mode = #tpu.pipeline_mode<synchronous>, transform_indices = @transform_3, window_bounds = array<i64: 16, 16>}, {pipeline_mode = #tpu.pipeline_mode<synchronous>, transform_indices = @transform_4, window_bounds = array<i64: 1, 16>}, {pipeline_mode = #tpu.pipeline_mode<synchronous>, transform_indices = @transform_5, window_bounds = array<i64: 16, 16>}, {pipeline_mode = #tpu.pipeline_mode<synchronous>, transform_indices = @transform_6, window_bounds = array<i64: 1, 16>}, {transform_indices = @transform_7, window_bounds = array<i64: 1, 1, 16>}]} {
    %c0 = arith.constant 0 : index
    %c0_0 = arith.constant 0 : index
    %c0_1 = arith.constant 0 : index
    %0 = vector.load %arg1[%c0, %c0_0, %c0_1] : memref<1x4x16xbf16, #tpu.memory_space<vmem>>, vector<1x4x16xbf16>
    %1 = vector.shape_cast %0 : vector<1x4x16xbf16> to vector<4x16xbf16>
    %2 = arith.extf %1 : vector<4x16xbf16> to vector<4x16xf32>
    %c0_2 = arith.constant 0 : index
    %c0_3 = arith.constant 0 : index
    %3 = vector.load %arg2[%c0_2, %c0_3] : memref<1x16xf32, #tpu.memory_space<vmem>>, vector<1x16xf32>
    %4 = vector.broadcast %3 : vector<1x16xf32> to vector<4x16xf32>
    %5 = arith.mulf %2, %4 : vector<4x16xf32>
    %cst = arith.constant dense<0.000000e+00> : vector<4xf32>
    %6 = vector.multi_reduction <add>, %5, %cst [1] : vector<4x16xf32> to vector<4xf32>
    %7 = vector.shape_cast %6 : vector<4xf32> to vector<4x1xf32>
    %c0_4 = arith.constant 0 : index
    %c0_5 = arith.constant 0 : index
    %8 = vector.load %arg3[%c0_4, %c0_5] : memref<1x1xf32, #tpu.memory_space<vmem>>, vector<1x1xf32>
    %9 = vector.broadcast %8 : vector<1x1xf32> to vector<4x1xf32>
    %10 = arith.addf %7, %9 : vector<4x1xf32>
    %cst_6 = arith.constant dense<0xFF800000> : vector<1xf32>
    %11 = vector.multi_reduction <maximumf>, %10, %cst_6 [0] : vector<4x1xf32> to vector<1xf32>
    %12 = vector.shape_cast %11 : vector<1xf32> to vector<1x1xf32>
    %13 = vector.broadcast %12 : vector<1x1xf32> to vector<4x1xf32>
    %14 = arith.subf %10, %13 : vector<4x1xf32>
    %15 = math.exp %14 : vector<4x1xf32>
    %cst_7 = arith.constant dense<0.000000e+00> : vector<1xf32>
    %16 = vector.multi_reduction <add>, %15, %cst_7 [0] : vector<4x1xf32> to vector<1xf32>
    %17 = vector.shape_cast %16 : vector<1xf32> to vector<1x1xf32>
    %18 = vector.broadcast %17 : vector<1x1xf32> to vector<4x1xf32>
    %19 = arith.divf %15, %18 : vector<4x1xf32>
    %20 = vector.broadcast %19 : vector<4x1xf32> to vector<4x16xf32>
    %21 = arith.mulf %20, %2 : vector<4x16xf32>
    %cst_8 = arith.constant dense<0.000000e+00> : vector<16xf32>
    %22 = vector.multi_reduction <add>, %21, %cst_8 [0] : vector<4x16xf32> to vector<16xf32>
    %23 = vector.shape_cast %22 : vector<16xf32> to vector<1x16xf32>
    %24 = arith.truncf %23 : vector<1x16xf32> to vector<1x16xbf16>
    %c0_9 = arith.constant 0 : index
    %c0_10 = arith.constant 0 : index
    %25 = vector.load %arg4[%c0_9, %c0_10] : memref<16x16xbf16, #tpu.memory_space<vmem>>, vector<16x16xbf16>
    %cst_11 = arith.constant dense<0.000000e+00> : vector<1x16xf32>
    %26 = tpu.matmul %24, %25, %cst_11 {dimension_numbers = #tpu.dot_dimension_numbers<[1], [0], [0], [1], [0, 0, 1, 1], [], []>} : vector<1x16xbf16>, vector<16x16xbf16>, vector<1x16xf32> -> vector<1x16xf32>
    %c0_12 = arith.constant 0 : index
    %c0_13 = arith.constant 0 : index
    %27 = vector.load %arg5[%c0_12, %c0_13] : memref<1x16xf32, #tpu.memory_space<vmem>>, vector<1x16xf32>
    %28 = arith.addf %26, %27 : vector<1x16xf32>
    %29 = arith.mulf %28, %28 : vector<1x16xf32>
    %30 = arith.mulf %28, %29 : vector<1x16xf32>
    %cst_14 = arith.constant 4.471500e-02 : f32
    %31 = vector.broadcast %cst_14 : f32 to vector<1x16xf32>
    %32 = arith.mulf %31, %30 : vector<1x16xf32>
    %33 = arith.addf %28, %32 : vector<1x16xf32>
    %cst_15 = arith.constant 0.797884583 : f32
    %34 = vector.broadcast %cst_15 : f32 to vector<1x16xf32>
    %35 = arith.mulf %34, %33 : vector<1x16xf32>
    %36 = math.tanh %35 : vector<1x16xf32>
    %cst_16 = arith.constant 1.000000e+00 : f32
    %37 = vector.broadcast %cst_16 : f32 to vector<1x16xf32>
    %38 = arith.addf %37, %36 : vector<1x16xf32>
    %cst_17 = arith.constant 5.000000e-01 : f32
    %39 = vector.broadcast %cst_17 : f32 to vector<1x16xf32>
    %40 = arith.mulf %39, %38 : vector<1x16xf32>
    %41 = arith.mulf %28, %40 : vector<1x16xf32>
    %42 = arith.truncf %41 : vector<1x16xf32> to vector<1x16xbf16>
    %c0_18 = arith.constant 0 : index
    %c0_19 = arith.constant 0 : index
    %43 = vector.load %arg6[%c0_18, %c0_19] : memref<16x16xbf16, #tpu.memory_space<vmem>>, vector<16x16xbf16>
    %cst_20 = arith.constant dense<0.000000e+00> : vector<1x16xf32>
    %44 = tpu.matmul %42, %43, %cst_20 {dimension_numbers = #tpu.dot_dimension_numbers<[1], [0], [0], [1], [0, 0, 1, 1], [], []>} : vector<1x16xbf16>, vector<16x16xbf16>, vector<1x16xf32> -> vector<1x16xf32>
    %c0_21 = arith.constant 0 : index
    %c0_22 = arith.constant 0 : index
    %45 = vector.load %arg7[%c0_21, %c0_22] : memref<1x16xf32, #tpu.memory_space<vmem>>, vector<1x16xf32>
    %46 = arith.addf %44, %45 : vector<1x16xf32>
    %c0_23 = arith.constant 0 : index
    %c0_24 = arith.constant 0 : index
    %c0_25 = arith.constant 0 : index
    %47 = vector.load %arg8[%c0_23, %c0_24, %c0_25] : memref<1x1x16xf32, #tpu.memory_space<vmem>>, vector<1x1x16xf32>
    %48 = vector.shape_cast %47 : vector<1x1x16xf32> to vector<1x16xf32>
    %49 = vector.shape_cast %46 : vector<1x16xf32> to vector<1x1x16xf32>
    tpu.vector_store %arg8[%c0_23, %c0_24, %c0_25], %49 {strides = array<i32>} : memref<1x1x16xf32, #tpu.memory_space<vmem>>, vector<1x1x16xf32>,
    return
  }
  func.func @transform_0(%arg0: i32) -> (i32, i32, i32) {
    %c0_i32 = arith.constant 0 : i32
    %c0_i32_0 = arith.constant 0 : i32
    %c0_i32_1 = arith.constant 0 : i32
    return %arg0, %c0_i32, %c0_i32_0 : i32, i32, i32
  }
  func.func @transform_1(%arg0: i32) -> (i32, i32) {
    %c0_i32 = arith.constant 0 : i32
    %c0_i32_0 = arith.constant 0 : i32
    %c0_i32_1 = arith.constant 0 : i32
    return %c0_i32, %c0_i32_0 : i32, i32
  }
  func.func @transform_2(%arg0: i32) -> (i32, i32) {
    %c0_i32 = arith.constant 0 : i32
    %c0_i32_0 = arith.constant 0 : i32
    %c0_i32_1 = arith.constant 0 : i32
    return %c0_i32, %c0_i32_0 : i32, i32
  }
  func.func @transform_3(%arg0: i32) -> (i32, i32) {
    %c0_i32 = arith.constant 0 : i32
    %c0_i32_0 = arith.constant 0 : i32
    %c0_i32_1 = arith.constant 0 : i32
    return %c0_i32, %c0_i32_0 : i32, i32
  }
  func.func @transform_4(%arg0: i32) -> (i32, i32) {
    %c0_i32 = arith.constant 0 : i32
    %c0_i32_0 = arith.constant 0 : i32
    %c0_i32_1 = arith.constant 0 : i32
    return %c0_i32, %c0_i32_0 : i32, i32
  }
  func.func @transform_5(%arg0: i32) -> (i32, i32) {
    %c0_i32 = arith.constant 0 : i32
    %c0_i32_0 = arith.constant 0 : i32
    %c0_i32_1 = arith.constant 0 : i32
    return %c0_i32, %c0_i32_0 : i32, i32
  }
  func.func @transform_6(%arg0: i32) -> (i32, i32) {
    %c0_i32 = arith.constant 0 : i32
    %c0_i32_0 = arith.constant 0 : i32
    %c0_i32_1 = arith.constant 0 : i32
    return %c0_i32, %c0_i32_0 : i32, i32
  }
  func.func @transform_7(%arg0: i32) -> (i32, i32, i32) {
    %c0_i32 = arith.constant 0 : i32
    %c0_i32_0 = arith.constant 0 : i32
    %c0_i32_1 = arith.constant 0 : i32
    return %arg0, %c0_i32, %c0_i32_0 : i32, i32, i32
  }
}

</mosaic_0001>

<bundles_post_ra>
// kernel: tpu_custom_call.1
= control target key start
LH: loop header
LB: loop body
LE: loop exit
PB: predicated region body
PF: predicated region fallthrough
CT: control target
= control target key end

     0   :  { %7 = vsyncpa [#allocation3], 0  ;;  %s690_s0 = inlined_call_operand.hbm [shape: f32[16,128], index: 0, kind: input, shape index: {}]   ;;  %s691_s1 = inlined_call_operand.hbm [shape: f32[8,128], index: 1, kind: input, shape index: {}]   ;;  %s692_s2 = inlined_call_operand.hbm [shape: f32[16,128], index: 2, kind: output, shape index: {}]  }
   0x1   :  { %9 = vsyncpa [#allocation3 + $0x1], 0 }
   0x2   :  { %10 = vsyncpa [#allocation6], 0 }
   0x3   :  { %11 = vsyncpa [#allocation4], 0 }
   0x4   :  { %13 = vsyncpa [#allocation4 + $0x1], 0  ;;  %s489_s9 = smov 0   ;;  %s491_s10 = smov 0  }
   0x5   :  { %s493_s11 = smov 0   ;;  %s495_s12 = smov 0  }
   0x6 LB: > { %s510_s13 = sadd.s32 4294967295, %s469_s12   ;;  %s270_s14 = sadd.s32 4294967294, %s469_s12   ;;  %s469_s12 = sphi %s495_s12, %s716_s12   ;;  %s465_s11 = sphi %s493_s11, %s715_s11   ;;  %s461_s10 = sphi %s491_s10, %s714_s10   ;;  %s457_s9 = sphi %s489_s9, %s713_s9  }
   0x7   : > { %p39_p0 = scmp.ne.s32.totalorder %s461_s10, %s457_s9  ;;  %p693_p1 = scmp.eq.s32.totalorder %s510_s13, 0 }
   0x8   : > { %p90_p3 = scmp.eq.s32.totalorder %s270_s14, 1  ;;  %p271_p5 = scmp.ge.s32.totalorder %s469_s12, 1 }
   0x9   : > { %p519_p4 = por %p693_p1, %p39_p0  ;;  %p97_p7 = scmp.lt.s32.totalorder %s469_s12, 3 }
   0xa   : > { %p524_p6 = por %p90_p3, %p39_p0  ;;  %s471_s18 = smov [#allocation5]  }
   0xb   : > { %s696_s15 = scalar_select %p519_p4, 1, 0 }
   0xc   : > { %s697_s16 = scalar_select %p524_p6, 1, 0 }
   0xd   : > { %p529_p8 = pnand %p271_p5, %p97_p7  ;;  %s110_s19 = sshll.u32 %s471_s18, 4  ;;  %s111_s19 = int_to_ptr.vmem [resolvable:$true] %s110_s19 }
   0xe   : > { %s537_s20 = sadd.s32 1, %s469_s12   ;;  %s26_s24 = sadd.s32 1, %s465_s11 }
   0xf   : > { %s698_s17 = scalar_select %p529_p8, 1, 0 }
  0x10   : > { %p292_p10 = pneg %p529_p8  ;;  %s23_s22 = ssub.s32 %s469_s12, %s537_s20 }
  0x11   : > { %p547_p12 = scmp.eq.s32.totalorder %s23_s22, 0  ;;  %s341_s27 = scalar_lea.hbm %s691_s1, 128 }
  0x12   : > { %p541_p11 = pnand %p292_p10, %p693_p1  ;;  %p342_p0 = scmp.ne.s32.totalorder %s691_s1, %s341_s27 }
  0x13   : > { %s700_s23 = scalar_select %p547_p12, 1, 0 }
  0x14   : > { %p343_p3 = pneg %p541_p11  ;;  %p348_p10 = scmp.lt.u32.totalorder %s341_s27, %s691_s1 }
  0x16   : > { %p344_p5 = pnand %p343_p3, %p342_p0 }
  0x18   : > { %p345_p7 = pneg %p344_p5 }
  0x1a   : > { %p350_p9 = pnand %p348_p10, %p345_p7 }
  0x1c   : > { %353 = shalt.err (!%p350_p9)
}
  0x1d   : > { %s354_s4 = scalar_lea.vmem %s111_s19, 128  ;;  %p362_p6 = scmp.lt.s32.totalorder %s111_s19, %s111_s19 }
  0x1e   : > { %p355_p1 = scmp.ne.s32.totalorder %s111_s19, %s354_s4  ;;  %p363_p4 = scmp.lt.s32.totalorder %s354_s4, %s354_s4 }
  0x20   : > { %p357_p2 = pnand %p355_p1, %p343_p3  ;;  %p364_p8 = por %p363_p4, %p362_p6 }
  0x22   : > { %p358_p13 = pneg %p357_p2 }
  0x24   : > { %p365_p12 = pnand %p364_p8, %p358_p13 }
  0x26   : > { %368 = shalt.err (!%p365_p12)
}
  0x27   : > { %295 = dma.hbm_to_vmem [thread:$0]  (!%p541_p11), %s691_s1, 128, %s111_s19, [#allocation6]  }
  0x28   : > { %p701_p1 = scmp.ne.s32.totalorder %s700_s23, 0  ;;  %p34_p2 = scmp.eq.s32.totalorder %s469_s12, 0 }
  0x29   : > { %p702_p4 = scmp.ne.s32.totalorder %s465_s11, %s461_s10  ;;  %p703_p6 = scmp.eq.s32.totalorder %s510_s13, 1 }
  0x2a   : > { %s573_s7 = scalar_select %p701_p1, %s465_s11, %s26_s24  }
  0x2b   : > { %p581_p8 = por %p703_p6, %p702_p4  ;;  %p305_p9 = scmp.lt.s32.totalorder %s469_s12, 2 }
  0x2c   : > { %s121_s14 = sand.u32 1, %s465_s11   ;;  %p705_p12 = pmov %p702_p4 }
  0x2d   : > { %s274_s18 = sshll.u32 %s121_s14, 3  ;;  %s275_s21 = sshll.u32 %s469_s12, 7 }
  0x2e   : > { %p35_p13 = por %p34_p2, %p705_p12  ;;  %s594_s19 = scalar_lea.hbm %s690_s0, %s275_s21 }
  0x2f   : > { %s125_s23 = scalar_lea.vmem [#allocation2], %s274_s18  ;;  %s122_s27 = scalar_lea.sflag [#allocation3], %s121_s14 }
  0x30   : > { %s132_s24 = sshll.u32 %s125_s23, 4  ;;  %p596_p11 = pnand %p305_p9, %p35_p13  ;;  %s600_s24 = int_to_ptr.vmem [resolvable:$true] %s132_s24 }
  0x31   : > { %s369_s28 = scalar_lea.hbm %s594_s19, 128  ;;  %s374_s3 = scalar_lea.hbm %s690_s0, 256 }
  0x32   : > { %p370_p0 = scmp.ne.s32.totalorder %s594_s19, %s369_s28  ;;  %p371_p3 = pneg %p596_p11 }
  0x33   : > { %p375_p10 = scmp.lt.u32.totalorder %s594_s19, %s690_s0  ;;  %p376_p1 = scmp.lt.u32.totalorder %s374_s3, %s369_s28 }
  0x34   : > { %p372_p5 = pnand %p371_p3, %p370_p0  ;;  %p378_p4 = scmp.lt.u32.totalorder %s369_s28, %s594_s19 }
  0x35   : > { %p377_p2 = por %p376_p1, %p375_p10 }
  0x36   : > { %p373_p7 = pneg %p372_p5 }
  0x37   : > { %p379_p6 = por %p378_p4, %p377_p2 }
  0x39   : > { %p380_p9 = pnand %p379_p6, %p373_p7 }
  0x3b   : > { %383 = shalt.err (!%p380_p9)
}
  0x3c   : > { %s384_s6 = scalar_lea.vmem %s600_s24, 128  ;;  %s472_s14 = smov [#allocation2]  }
  0x3d   : > { %p385_p12 = scmp.ne.s32.totalorder %s600_s24, %s384_s6  ;;  %s389_s18 = sshll.u32 %s472_s14, 4  ;;  %s390_s18 = int_to_ptr.vmem [resolvable:$false] %s389_s18 }
  0x3e   : > { %s391_s21 = scalar_lea.vmem %s390_s18, 256  ;;  %p392_p5 = scmp.lt.s32.totalorder %s600_s24, %s390_s18 }
  0x3f   : > { %p387_p13 = pnand %p385_p12, %p371_p3  ;;  %p393_p10 = scmp.lt.s32.totalorder %s391_s21, %s384_s6 }
  0x41   : > { %p388_p0 = pneg %p387_p13  ;;  %p394_p1 = por %p393_p10, %p392_p5 }
  0x43   : > { %p395_p2 = pnand %p394_p1, %p388_p0 }
  0x45   : > { %398 = shalt.err (!%p395_p2)
}
  0x46   : > { %299 = dma.hbm_to_vmem [thread:$0]  (!%p596_p11), %s594_s19, 128, %s600_s24, %s122_s27  }
  0x47   : > { %p707_p7 = scmp.ne.s32.totalorder %s698_s17, 0 }
  0x48   : > { %s630_s22 = sand.u32 (!%p707_p7), 1, %s461_s10   ;;  %p708_p3 = scmp.ne.s32.totalorder (!%p707_p7), %s696_s15, 0 }
  0x49   : > { %141 = sbr.rel (%p707_p7) target bundleno = 109 (0x6d), region = 28  ;;  %s277_s25 = sshll.u32 (!%p707_p7), %s630_s22, 3 }
  0x4a   : > { %s144_s23 = scalar_lea.sflag (!%p707_p7), [#allocation3], %s630_s22  ;;  %s147_s28 = scalar_lea.vmem (!%p707_p7), [#allocation2], %s277_s25 }
  0x50   : > { %444 = dma.done.wait (%p708_p3), %s144_s23, 128  }
  0x51   : > { %446 = vsyncadd (%p708_p3), %s144_s23, 4294967168  ;;  %p709_p4 = scmp.eq.s32.totalorder %s510_s13, 0 }
  0x53   : > { %448 = dma.done.wait (%p709_p4), [#allocation6], 128   ;;  %p710_p11 = pmov %p709_p4 }
  0x54   : > { %s171_s17 = scalar_lea.vmem [#allocation7], %s277_s25  ;;  %s281_s24 = sshll.u32 %s510_s13, 7  ;;  %v172_v0 = vld [vmem:[%s147_s28] sm:$0xff]  ;;  %v173_v1 = vld [vmem:[#allocation5] sm:$0xff] }
  0x55   : > { %450 = vsyncadd (%p710_p11), [#allocation6], 4294967168  ;;  %s190_s19 = sshll.u32 %s171_s17, 4  ;;  %v174_v2 = vadd.f32 %v173_v1, %v172_v0  ;;  %s648_s27 = scalar_lea.hbm %s692_s2, %s281_s24  ;;  %s643_s19 = int_to_ptr.vmem [resolvable:$true] %s190_s19 }
  0x56   : > { %s177_s29 = scalar_lea.sflag [#allocation4], %s630_s22  ;;  %s399_s30 = scalar_lea.vmem %s643_s19, 128 }
  0x57   : > { %175 = vst [vmem:[%s171_s17] sm:$0xff] %v174_v2  ;;  %p400_p6 = scmp.ne.s32.totalorder %s643_s19, %s399_s30  ;;  %s473_s13 = smov [#allocation7]  }
  0x58   : > { %s403_s3 = sshll.u32 %s473_s13, 4  ;;  %s404_s3 = int_to_ptr.vmem [resolvable:$false] %s403_s3 }
  0x59   : > { %p401_p9 = pnand %p400_p6, %p581_p8  ;;  %s405_s4 = scalar_lea.vmem %s404_s3, 256 }
  0x5a   : > { %p406_p13 = scmp.lt.s32.totalorder %s643_s19, %s404_s3  ;;  %p407_p0 = scmp.lt.s32.totalorder %s405_s4, %s399_s30 }
  0x5b   : > { %p402_p12 = pneg %p401_p9 }
  0x5c   : > { %p408_p5 = por %p407_p0, %p406_p13 }
  0x5e   : > { %p409_p10 = pnand %p408_p5, %p402_p12 }
  0x60   : > { %412 = shalt.err (!%p409_p10)
}
  0x61   : > { %s413_s5 = scalar_lea.hbm %s648_s27, 128  ;;  %s417_s18 = scalar_lea.hbm %s692_s2, 256 }
  0x62   : > { %p414_p1 = scmp.ne.s32.totalorder %s648_s27, %s413_s5  ;;  %p418_p3 = scmp.lt.u32.totalorder %s648_s27, %s692_s2 }
  0x63   : > { %p419_p4 = scmp.lt.u32.totalorder %s417_s18, %s413_s5  ;;  %p421_p6 = scmp.lt.u32.totalorder %s413_s5, %s648_s27 }
  0x64   : > { %p415_p2 = pnand %p414_p1, %p581_p8 }
  0x65   : > { %p420_p11 = por %p419_p4, %p418_p3 }
  0x66   : > { %p416_p7 = pneg %p415_p2 }
  0x67   : > { %p422_p9 = por %p421_p6, %p420_p11 }
  0x69   : > { %p423_p12 = pnand %p422_p9, %p416_p7 }
  0x6b   : > { %426 = shalt.err (!%p423_p12)
}
  0x6c   : > { %290 = dma.vmem_to_hbm [thread:$0]  (%p581_p8), %s643_s19, 128, %s648_s27, %s177_s29  }
  0x6d PF: > { %s202_s25 = sand.u32 1, %s457_s9   ;;  %p711_p13 = scmp.ne.s32.totalorder %s697_s16, 0 }
  0x6e   : > { %p712_p0 = scmp.ge.s32.totalorder %s469_s12, 2  ;;  %s203_s23 = scalar_lea.sflag [#allocation4], %s202_s25 }
  0x70   : > { %p301_p5 = pnand %p712_p0, %p711_p13 }
  0x72   : > { %452 = dma.done.wait (!%p301_p5), %s203_s23, 128  }
  0x73   : > { %454 = vsyncadd (!%p301_p5), %s203_s23, 4294967168  ;;  %p16_p10 = scmp.ge.s32.totalorder %s537_s20, 4   ;;  %s713_s9 = smov %s461_s10 }
  0x74   : > { %s714_s10 = smov %s465_s11  ;;  %s715_s11 = smov %s573_s7 }
  0x75   : > { %s716_s12 = smov %s537_s20  ;;  %18 = sbr.rel (!%p16_p10) target bundleno = 6 (0x6), region = 77 }
  0x7c   :  { %208 = vsyncpa [#allocation3], 1 }
  0x7d   :  { %210 = vsyncpa [#allocation3 + $0x1], 1 }
  0x7e   :  { %211 = vsyncpa [#allocation6], 1 }
  0x7f   :  { %212 = vsyncpa [#allocation4], 1 }
  0x80   :  { %214 = vsyncpa [#allocation4 + $0x1], 1 }

// kernel: _lambda_.9
= control target key start
LH: loop header
LB: loop body
LE: loop exit
PB: predicated region body
PF: predicated region fallthrough
CT: control target
= control target key end

     0   :  { %s722_s15 = smov 0   ;;  %s724_s16 = smov 0   ;;  %s798_s0 = inlined_call_operand.vmem [shape: bf16[2,4,16], index: 0, kind: input, shape index: {}]   ;;  %s799_s1 = inlined_call_operand.vmem [shape: bf16[2,16,24], index: 1, kind: input, shape index: {}]   ;;  %s800_s2 = inlined_call_operand.vmem [shape: f32[2,1,24], index: 2, kind: input, shape index: {}]   ;;  %s801_s3 = inlined_call_operand.vmem [shape: bf16[2,4,4], index: 3, kind: input, shape index: {}]   ;;  %s802_s4 = inlined_call_operand.vmem [shape: bf16[2,2,4,8], index: 4, kind: output, shape index: {}]  }
   0x1   :  { %s726_s17 = smov 0   ;;  %s728_s18 = smov 0  }
   0x2   :  { %s730_s19 = smov 0  }
   0x3 LB: > { %s23_s20 = sadd.s32 1, %s683_s17  ;;  %s26_s21 = sadd.s32 1, %s687_s18  ;;  %s691_s19 = sphi %s730_s19, %s14_s19   ;;  %s687_s18 = sphi %s728_s18, %s806_s18   ;;  %s683_s17 = sphi %s726_s17, %s805_s17   ;;  %s679_s16 = sphi %s724_s16, %s804_s16   ;;  %s675_s15 = sphi %s722_s15, %s803_s15  }
   0x4   : > { %p24_p0 = scmp.ge.s32.totalorder %s23_s20, 2  ;;  %p565_p1 = scmp.ge.s32.totalorder %s691_s19, 1 }
   0x5   : > { %p202_p2 = scmp.lt.s32.totalorder %s691_s19, 5 }
   0x6   : > { %s808_s20 = smov (%p24_p0, %s23_s20), 0  ;;  %s810_s21 = smov (!%p24_p0, %s26_s21), %s687_s18 }
   0x7   : > { %p203_p3 = pnand %p565_p1, %p202_p2  ;;  %p28_p4 = scmp.ge.s32.totalorder %s810_s21, 2 }
   0x8   : > { %p246_p5 = scmp.lt.s32.totalorder (!%p203_p3), %s675_s15, 1  ;;  %p242_p6 = scmp.lt.s32.totalorder (!%p203_p3), %s679_s16, 1  ;;  %v693_v0 = vmov (!%p203_p3), 0.0   ;;  %vm694_vm0 = vmmov (!%p203_p3), 0   ;;  %vm283_vm1 = vcmask (!%p203_p3), 130048   ;;  %vm335_vm2 = vcmask (!%p203_p3), 64512  }
   0x9   : > { %s812_s21 = smov (%p28_p4, %s810_s21), 0  ;;  %206 = sbr.rel (%p203_p3) target bundleno = 1107 (0x453), region = 36 }
   0xa   : > { %586 = vmatprep.subr.bf16.mxu0 (!%p203_p3), %v693_v0  ;;  %588 = vmatprep.mubr.msk.bf16.mxu0 (!%p203_p3), %vm694_vm0, %v693_v0  ;;  %s695_s7 = smov (!%p203_p3), 120   ;;  %vm382_vm3 = vcmask (!%p203_p3), 27648   ;;  %s696_s12 = smov (!%p203_p3), 112   ;;  %vm401_vm4 = vcmask (!%p203_p3), 1041408   ;;  %vm397_vm5 = vcmask (!%p203_p3), 31744   ;;  %vm446_vm6 = vcmask (!%p203_p3), 58368  }
   0xb   : > { %592 = vmatprep.subr.bf16.mxu1 (!%p203_p3), %v693_v0  ;;  %594 = vmatprep.mubr.msk.bf16.mxu1 (!%p203_p3), %vm694_vm0, %v693_v0 }
  0x10   : > { %s814_s15 = smov (!%p246_p5, %s675_s15), 1  ;;  %s816_s16 = smov (!%p242_p6, %s679_s16), 1 }
  0x11   : > { %s579_s22 = sshll.u32 %s814_s15, 3  ;;  %s566_s26 = sshll.u32 %s816_s16, 1 }
  0x12   : > { %s250_s25 = scalar_lea.vmem %s799_s1, %s579_s22  ;;  %s245_s29 = scalar_lea.vmem %s798_s0, %s566_s26 }
  0x13   : > { %v648_v1 = vld [vmem:[%s250_s25] sm:$0xff]   ;;  %s253_s6 = scalar_lea.vmem %s800_s2, %s814_s15  ;;  %s569_s8 = sshll.u32 %s814_s15, 1 }
  0x14   : > { %587 = vmatpush3.bf16.msra.mxu0 %v648_v1  ;;  %v267_v2 = vld [vmem:[%s245_s29] sm:$0x3]  ;;  %s257_s11 = scalar_lea.vmem %s801_s3, %s569_s8  ;;  %s263_s13 = sadd.s32 %s566_s26, %s814_s15 }
  0x15   : > { %598 = vmatprep.subr.bf16.mxu0 %v693_v0  ;;  %v572_v3 = vld [vmem:[%s253_s6] ss:$0 sm:$0xff]  ;;  %s571_s14 = sshll.u32 %s263_s13, 1 }
  0x16   : > { %v330_v14 = vld [vmem:[%s257_s11] sm:$0x3]  ;;  %s265_s24 = scalar_lea.vmem %s802_s4, %s571_s14 }
  0x17   : > { %589 = vmatmul.mubr.msk.bf16.vlgmr.msra.gmra.mrb[0].mxu0 %vm283_vm1, %v267_v2  ;;  %v331_v15 = vunpack.c.l.bf16 %v330_v14 }
  0x18   : > { %600 = vmatprep.mubr.msk.bf16.mxu0 %vm694_vm0, %v693_v0 }
  0xea   : > { %v321_v4 = vpop.f32.mrb[0].mxu0 }
  0xeb   : > { %v322_v5 = vadd.f32 %v572_v3, %v321_v4  ;;  %v590_v6 = vpop.f32.mrb[1].mxu0 }
  0xec   : > { %v324_v7 = vpop.f32.mrb[2].mxu0 }
  0xed   : > { %v591_v8 = vpop.f32.mrb[3].mxu0  ;;  %v329_v9 = vpack.c.bf16 %v322_v5, %v322_v5  ;;  %v327_v12 = vmul.f32 0.35355338, %v322_v5 }
  0xef   : > { %333 = vrot.lane.b32.xlu0 %v329_v9, %s695_s7  ;;  %v328_v13 = vpack.c.bf16 %v327_v12, %v327_v12 }
 0x161   : > { %v334_v10 = vpop.permute.xlu0 %333 }
 0x162   : > { %v340_v11 = vsel %vm335_vm2, %v334_v10, 0 }
 0x163   : > { %593 = vmatpush3.bf16.xpose.msra.mxu1 %v340_v11 }
 0x16a   : > { %595 = vmatmul.mubr.msk.bf16.vlgmr.msra.gmra.mrb[0].mxu1 %vm335_vm2, %v328_v13 }
 0x23d   : > { %v376_v16 = vpop.f32.mrb[0].mxu1 }
 0x23e   : > { %v377_v17 = vadd.f32 %v376_v16, %v331_v15  ;;  %v596_v18 = vpop.f32.mrb[1].mxu1 }
 0x23f   : > { %v379_v19 = vpop.f32.mrb[2].mxu1 }
 0x240   : > { %v597_v20 = vpop.f32.mrb[3].mxu1  ;;  %v383_v21 = vsel %vm382_vm3, %v377_v17, -inf }
 0x241   : > { %384 = vmax.xlane.f32.xlu0 %v383_v21 }
 0x2ce   : > { %v385_v22 = vpop.xlane.xlu0 %384 }
 0x2cf   : > { %v386_v23 = vsub.f32 %v377_v17, %v385_v22 }
 0x2d1   : > { %v387_v24 = vmul.f32 1.442695, %v386_v23 }
 0x2d3   : > { %649 = vpow2.f32 %v387_v24 }
 0x2dd   : > { %v650_v25 = vpop.eup %649 }
 0x2de   : > { %v389_v26 = vsel %vm382_vm3, %v650_v25, 0.0 }
 0x2df   : > { %390 = vadd.xlane.f32.xlu1 %v389_v26 }
 0x2f0   : > { %395 = vrot.lane.b32.xlu1 %v329_v9, %s696_s12 }
 0x36c   : > { %v391_v27 = vpop.xlane.xlu1 %390 }
 0x36d   : > { %651 = vrcp.f32 %v391_v27 }
 0x370   : > { %v396_v28 = vpop.permute.xlu1 %395 }
 0x371   : > { %v403_v29 = vsel %vm401_vm4, %v396_v28, 0 }
 0x372   : > { %599 = vmatpush3.bf16.msra.mxu0 %v403_v29 }
 0x377   : > { %v652_v30 = vpop.eup %651 }
 0x378   : > { %v393_v31 = vmul.f32 %v652_v30, %v650_v25 }
 0x37a   : > { %v394_v32 = vpack.c.bf16 %v393_v31, %v393_v31 }
 0x37c   : > { %601 = vmatmul.mubr.msk.bf16.vlgmr.msra.gmra.mrb[4].mxu0 %vm397_vm5, %v394_v32 }
 0x44f   : > { %v439_v33 = vpop.f32.mrb[4].mxu0 }
 0x450   : > { %v445_v34 = vpack.c.bf16 %v439_v33, %v439_v33  ;;  %v602_v35 = vpop.f32.mrb[5].mxu0 }
 0x451   : > { %v442_v36 = vpop.f32.mrb[6].mxu0 }
 0x452   : > { %447 = vst.msk [vmem:[%s265_s24] sm:$0x3] %vm446_vm6, %v445_v34  ;;  %v603_v37 = vpop.f32.mrb[7].mxu0 }
 0x453 PF: > { %s14_s19 = sadd.s32 1, %s691_s19   ;;  %s803_s15 = smov %s683_s17 }
 0x454   : > { %p11_p7 = scmp.ge.s32.totalorder %s14_s19, 6   ;;  %s804_s16 = smov %s687_s18 }
 0x455   : > { %s805_s17 = smov %s808_s20  ;;  %s806_s18 = smov %s812_s21 }
 0x456   :  { %13 = sbr.rel (!%p11_p7) target bundleno = 3 (0x3), region = 75 }

// kernel: _lambda_.6
= control target key start
LH: loop header
LB: loop body
LE: loop exit
PB: predicated region body
PF: predicated region fallthrough
CT: control target
= control target key end

     0   :  { %s755_s18 = smov 0   ;;  %s803_s0 = inlined_call_operand.vmem [shape: f32[2,16,4], index: 0, kind: input, shape index: {}]   ;;  %s804_s1 = inlined_call_operand.vmem [shape: bf16[12,8], index: 1, kind: input, shape index: {}]   ;;  %s805_s2 = inlined_call_operand.vmem [shape: f32[1,8], index: 2, kind: input, shape index: {}, may-alias: {2,4}]   ;;  %s806_s3 = inlined_call_operand.vmem [shape: bf16[4,8], index: 3, kind: input, shape index: {}]   ;;  %s807_s4 = inlined_call_operand.vmem [shape: f32[1,8], index: 4, kind: input, shape index: {}, may-alias: {2,4}]   ;;  %s808_s5 = inlined_call_operand.vmem [shape: bf16[2,8,8], index: 5, kind: output, shape index: {}]  }
   0x1 LB: > { %s636_s19 = sadd.s32 4294967295, %s718_s18   ;;  %p640_p0 = scmp.ge.s32.totalorder %s718_s18, 1  ;;  %s718_s18 = sphi %s755_s18, %s15_s18  }
   0x2   : > { %p187_p1 = scmp.lt.s32.totalorder %s718_s18, 3 }
   0x4   : > { %p188_p2 = pnand %p640_p0, %p187_p1 }
   0x5   : > { %p214_p3 = scmp.lt.s32.totalorder (!%p188_p2), %s636_s19, 1  ;;  %vm232_vm2 = vcmask (!%p188_p2), 1040384   ;;  %v707_v2 = vld [vmem:[%s804_s1] sm:$0x3f] (!%p188_p2)   ;;  %vm255_vm3 = vcmask (!%p188_p2), 1045504   ;;  %v720_v7 = vmov (!%p188_p2), 0.0   ;;  %v421_v61 = vlaneseq (!%p188_p2) }
   0x6   : > { %191 = sbr.rel (%p188_p2) target bundleno = 430 (0x1ae), region = 40  ;;  %672 = vmatprep.subr.bf16.mxu0 (!%p188_p2), %v720_v7  ;;  %v293_v8 = vsel (!%p188_p2), %vm255_vm3, %v707_v2, 0  ;;  %678 = vmatprep.subr.bf16.mxu1 (!%p188_p2), %v720_v7  ;;  %vm243_vm4 = vcmask (!%p188_p2), 1046528   ;;  %vm721_vm5 = vmmov (!%p188_p2), 0   ;;  %v355_v18 = vld [vmem:[%s806_s3] sm:$0x3] (!%p188_p2) }
   0x7   : > { %673 = vmatpush3.bf16.msra.mxu0 (!%p188_p2), %v293_v8  ;;  %674 = vmatprep.mubr.msk.bf16.mxu0 (!%p188_p2), %vm721_vm5, %v720_v7  ;;  %vm359_vm6 = vcmask (!%p188_p2), 1041408   ;;  %s722_s28 = smov (!%p188_p2), 4   ;;  %vm267_vm7 = vcmask (!%p188_p2), 31744   ;;  %s723_s29 = smov (!%p188_p2), 8   ;;  %vm270_vm8 = vcmask (!%p188_p2), 64512   ;;  %vm288_vm9 = vcmask (!%p188_p2), 97280  }
   0x8   : > { %680 = vmatprep.mubr.msk.bf16.mxu1 (!%p188_p2), %vm721_vm5, %v720_v7  ;;  %v361_v21 = vsel (!%p188_p2), %vm359_vm6, %v355_v18, 0  ;;  %v644_v42 = vld [vmem:[%s805_s2] ss:$0 sm:$0xff] (!%p188_p2)  ;;  %v724_v59 = vmov (!%p188_p2), 1983009808   ;;  %vm459_vm10 = vcmask (!%p188_p2), 58368  }
   0x9   : > { %679 = vmatpush3.bf16.msra.mxu1 (!%p188_p2), %v361_v21  ;;  %v419_v60 = vunpack.c.l.s4 (!%p188_p2), %v724_v59  ;;  %v648_v7 = vld [vmem:[%s807_s4] ss:$0 sm:$0xff] (!%p188_p2)  ;;  %vm565_vm11 = vcmask (!%p188_p2), 1041409   ;;  %vm567_vm12 = vcmask (!%p188_p2), 1042434   ;;  %vm569_vm13 = vcmask (!%p188_p2), 1043459  }
   0xa   : > { %vm571_vm14 = vcmask (!%p188_p2), 1044484   ;;  %vm573_vm15 = vcmask (!%p188_p2), 1045509  }
   0xb   : > { %v420_v2 = vunpack.c.0.s8 (!%p188_p2), %v419_v60 }
   0xd   : > { %s810_s19 = smov (!%p214_p3, %s636_s19), 1 }
   0xe   : > { %s659_s20 = sshll.u32 %s810_s19, 4  ;;  %s643_s9 = sshll.u32 %s810_s19, 2 }
   0xf   : > { %s218_s23 = scalar_lea.vmem %s803_s0, %s659_s20  ;;  %s222_s12 = scalar_lea.vmem %s808_s5, %s643_s9 }
  0x10   : > { %v224_v0 = vld [vmem:[%s218_s23] sm:$0xff]  ;;  %v225_v1 = vld [vmem:[%s218_s23 + $0x8] sm:$0xff] }
  0x11   : > { %vm226_vm0 = vcmp.eq.f32.partialorder %v224_v0, -2.0  ;;  %vm227_vm1 = vcmp.eq.f32.partialorder %v225_v1, -2.0 }
  0x12   : > { %v228_v3 = vsel %vm226_vm0, -1.0, %v224_v0  ;;  %v229_v4 = vsel %vm227_vm1, -1.0, %v225_v1  ;;  %vm575_vm0 = vcmask 1046534   ;;  %vm577_vm1 = vcmask 1047559  }
  0x13   : > { %v233_v5 = vrot.slane %v228_v3, 7  ;;  %v234_v6 = vrot.slane %v229_v4, 7  ;;  %v354_v22 = vpack.c.bf16 %v229_v4, %v228_v3  ;;  %v422_v3 = vshrl.u32 %v421_v61, 7 }
  0x15   : > { %v235_v9 = vsel %vm232_vm2, %v233_v5, %v234_v6  ;;  %v239_v10 = vsel %vm232_vm2, 0.0, %v233_v5  ;;  %v240_v11 = vsel %vm232_vm2, %v234_v6, 0.0  ;;  %681 = vmatmul.mubr.msk.bf16.vlgmr.msra.gmra.mrb[0].mxu1 %vm267_vm7, %v354_v22  ;;  %vm581_vm2 = vcmask 60416  }
  0x16   : > { %v244_v12 = vrot.slane %v239_v10, 1  ;;  %v245_v13 = vrot.slane %v235_v9, 1  ;;  %v247_v14 = vrot.slane %v240_v11, 1  ;;  %v259_v15 = vrot.slane %v240_v11, 2 }
  0x17   : > { %v256_v16 = vrot.slane %v239_v10, 2  ;;  %v257_v17 = vrot.slane %v235_v9, 2 }
  0x18   : > { %v246_v19 = vsel %vm243_vm4, %v244_v12, %v245_v13  ;;  %v248_v20 = vsel %vm243_vm4, %v245_v13, %v247_v14 }
  0x19   : > { %v697_v23 = vpack.i.bf16 %v248_v20, %v246_v19  ;;  %v258_v24 = vsel %vm255_vm3, %v256_v16, %v257_v17  ;;  %v260_v25 = vsel %vm255_vm3, %v257_v17, %v259_v15 }
  0x1a   : > { %v702_v26 = vpack.i.bf16 %v260_v25, %v258_v24 }
  0x1b   : > { %698 = vrot.lane.b32.xlu0 %v697_v23, %s722_s28 }
  0x1f   : > { %703 = vrot.lane.b32.xlu0 %v702_v26, %s723_s29 }
  0x8d   : > { %v699_v27 = vpop.permute.xlu0 %698 }
  0x8e   : > { %v701_v28 = vunpack.i.h.bf16 %v699_v27  ;;  %v700_v29 = vunpack.i.l.bf16 %v699_v27 }
  0x90   : > { %v269_v33 = vsel %vm267_vm7, %v235_v9, %v701_v28  ;;  %v268_v34 = vsel %vm267_vm7, %v239_v10, %v700_v29  ;;  %v423_v9 = vsub.s32 %v420_v2, %v422_v3 }
  0x91   : > { %v704_v30 = vpop.permute.xlu0 %703 }
  0x92   : > { %v706_v31 = vunpack.i.h.bf16 %v704_v30  ;;  %v705_v32 = vunpack.i.l.bf16 %v704_v30 }
  0x94   : > { %v271_v35 = vsel %vm270_vm8, %v268_v34, %v705_v32  ;;  %v272_v36 = vsel %vm270_vm8, %v269_v33, %v706_v31 }
  0x95   : > { %v273_v37 = vpack.c.bf16 %v272_v36, %v271_v35 }
  0x97   : > { %675 = vmatmul.mubr.msk.bf16.vlgmr.msra.gmra.mrb[0].mxu0 %vm288_vm9, %v273_v37 }
  0xe8   : > { %v397_v38 = vpop.f32.mrb[0].mxu1 }
  0xe9   : > { %v682_v39 = vpop.f32.mrb[1].mxu1 }
  0xea   : > { %v400_v40 = vpop.f32.mrb[2].mxu1 }
  0xeb   : > { %v683_v41 = vpop.f32.mrb[3].mxu1 }
 0x16a   : > { %v329_v43 = vpop.f32.mrb[0].mxu0 }
 0x16b   : > { %v330_v44 = vadd.f32 %v644_v42, %v329_v43  ;;  %v676_v45 = vpop.f32.mrb[1].mxu0 }
 0x16c   : > { %v332_v46 = vpop.f32.mrb[2].mxu0 }
 0x16d   : > { %v336_v47 = vmul.f32 %v330_v44, %v330_v44  ;;  %v333_v48 = vadd.f32 %v644_v42, %v332_v46  ;;  %v677_v49 = vpop.f32.mrb[3].mxu0 }
 0x16f   : > { %v338_v50 = vmul.f32 %v336_v47, %v330_v44  ;;  %v337_v51 = vmul.f32 %v333_v48, %v333_v48 }
 0x171   : > { %v340_v52 = vmul.f32 0.044715, %v338_v50  ;;  %v339_v53 = vmul.f32 %v337_v51, %v333_v48 }
 0x173   : > { %v342_v54 = vadd.f32 %v340_v52, %v330_v44  ;;  %v341_v55 = vmul.f32 0.044715, %v339_v53 }
 0x175   : > { %v343_v56 = vadd.f32 %v341_v55, %v333_v48  ;;  %v344_v57 = vmul.f32 0.7978846, %v342_v54 }
 0x177   : > { %708 = vtanh.f32 %v344_v57  ;;  %v345_v58 = vmul.f32 0.7978846, %v343_v56 }
 0x179   : > { %710 = vtanh.f32 %v345_v58 }
 0x181   : > { %v709_v62 = vpop.eup %708 }
 0x182   : > { %v348_v63 = vadd.f32 1.0, %v709_v62 }
 0x183   : > { %v711_v0 = vpop.eup %710 }
 0x184   : > { %v350_v1 = vmul.f32 0.5, %v348_v63  ;;  %v349_v4 = vadd.f32 1.0, %v711_v0 }
 0x186   : > { %v352_v5 = vmul.f32 %v350_v1, %v330_v44  ;;  %v351_v6 = vmul.f32 0.5, %v349_v4 }
 0x188   : > { %v404_v8 = vadd.f32 %v397_v38, %v352_v5  ;;  %v353_v10 = vmul.f32 %v351_v6, %v333_v48 }
 0x18a   : > { %v413_v11 = vadd.f32 %v648_v7, %v404_v8  ;;  %v405_v12 = vadd.f32 %v400_v40, %v353_v10 }
 0x18c   : > { %v417_v13 = vcombine.high %v413_v11, %v413_v11  ;;  %v424_v14 = vrot.slane %v413_v11, %v423_v9  ;;  %v414_v15 = vadd.f32 %v648_v7, %v405_v12 }
 0x18e   : > { %v431_v16 = vrot.slane %v417_v13, %v423_v9  ;;  %v432_v17 = vcombine.high %v424_v14, %v424_v14  ;;  %v460_v18 = vsel %vm459_vm10, %v424_v14, 0.0  ;;  %v434_v19 = vcombine.high %v414_v15, %v414_v15 }
 0x18f   : > { %v461_v20 = vrot.slane %v460_v18, 4  ;;  %v441_v21 = vrot.slane %v414_v15, %v423_v9 }
 0x190   : > { %v433_v22 = vcombine.high %v431_v16, %v431_v16  ;;  %v467_v23 = vsel %vm459_vm10, %v432_v17, 0.0  ;;  %v474_v24 = vsel %vm459_vm10, %v431_v16, 0.0  ;;  %v448_v25 = vrot.slane %v434_v19, %v423_v9 }
 0x191   : > { %v462_v26 = vadd.f32 %v461_v20, %v460_v18  ;;  %v468_v27 = vrot.slane %v467_v23, 4  ;;  %v475_v28 = vrot.slane %v474_v24, 4  ;;  %v449_v29 = vcombine.high %v441_v21, %v441_v21 }
 0x192   : > { %v481_v30 = vsel %vm459_vm10, %v433_v22, 0.0  ;;  %v450_v31 = vcombine.high %v448_v25, %v448_v25  ;;  %v488_v32 = vsel %vm459_vm10, %v441_v21, 0.0  ;;  %v502_v33 = vsel %vm459_vm10, %v448_v25, 0.0 }
 0x193   : > { %v463_v34 = vrot.slane %v462_v26, 2  ;;  %v469_v35 = vadd.f32 %v468_v27, %v467_v23  ;;  %v476_v36 = vadd.f32 %v475_v28, %v474_v24  ;;  %v482_v37 = vrot.slane %v481_v30, 4 }
 0x194   : > { %v489_v38 = vrot.slane %v488_v32, 4  ;;  %v495_v39 = vsel %vm459_vm10, %v449_v29, 0.0  ;;  %v503_v40 = vrot.slane %v502_v33, 4  ;;  %v509_v41 = vsel %vm459_vm10, %v450_v31, 0.0 }
 0x195   : > { %v464_v42 = vadd.f32 %v463_v34, %v462_v26  ;;  %v470_v43 = vrot.slane %v469_v35, 2  ;;  %v477_v44 = vrot.slane %v476_v36, 2  ;;  %v483_v45 = vadd.f32 %v482_v37, %v481_v30 }
 0x196   : > { %v490_v46 = vadd.f32 %v489_v38, %v488_v32  ;;  %v496_v47 = vrot.slane %v495_v39, 4  ;;  %v504_v48 = vadd.f32 %v503_v40, %v502_v33  ;;  %v510_v49 = vrot.slane %v509_v41, 4 }
 0x197   : > { %v465_v50 = vrot.slane %v464_v42, 1  ;;  %v471_v51 = vadd.f32 %v470_v43, %v469_v35  ;;  %v478_v52 = vadd.f32 %v477_v44, %v476_v36  ;;  %v484_v53 = vrot.slane %v483_v45, 2 }
 0x198   : > { %v491_v54 = vrot.slane %v490_v46, 2  ;;  %v497_v55 = vadd.f32 %v496_v47, %v495_v39  ;;  %v505_v56 = vrot.slane %v504_v48, 2  ;;  %v511_v57 = vadd.f32 %v510_v49, %v509_v41 }
 0x199   : > { %v466_v58 = vadd.f32 %v465_v50, %v464_v42  ;;  %v472_v59 = vrot.slane %v471_v51, 1  ;;  %v479_v60 = vrot.slane %v478_v52, 1  ;;  %v485_v61 = vadd.f32 %v484_v53, %v483_v45 }
 0x19a   : > { %v492_v62 = vadd.f32 %v491_v54, %v490_v46  ;;  %v498_v63 = vrot.slane %v497_v55, 2  ;;  %v506_v0 = vadd.f32 %v505_v56, %v504_v48  ;;  %v512_v1 = vrot.slane %v511_v57, 2 }
 0x19b   : > { %v473_v2 = vadd.f32 %v472_v59, %v471_v51  ;;  %v480_v3 = vadd.f32 %v479_v60, %v478_v52  ;;  %v486_v4 = vrot.slane %v485_v61, 1  ;;  %v517_v5 = vmul.f32 0.5, %v466_v58 }
 0x19c   : > { %v493_v6 = vrot.slane %v492_v62, 1  ;;  %v499_v7 = vadd.f32 %v498_v63, %v497_v55  ;;  %v507_v8 = vrot.slane %v506_v0, 1  ;;  %v513_v9 = vadd.f32 %v512_v1, %v511_v57 }
 0x19d   : > { %v487_v10 = vadd.f32 %v486_v4, %v485_v61  ;;  %v518_v11 = vmul.f32 0.5, %v473_v2  ;;  %v519_v12 = vmul.f32 0.5, %v480_v3  ;;  %v660_v13 = vpack.c.bf16 %v517_v5, %v517_v5 }
 0x19e   : > { %v494_v14 = vadd.f32 %v493_v6, %v492_v62  ;;  %v500_v15 = vrot.slane %v499_v7, 1  ;;  %v508_v16 = vadd.f32 %v507_v8, %v506_v0  ;;  %v514_v17 = vrot.slane %v513_v9, 1 }
 0x19f   : > { %v520_v18 = vmul.f32 0.5, %v487_v10  ;;  %v661_v19 = vpack.c.bf16 %v518_v11, %v518_v11  ;;  %v662_v20 = vpack.c.bf16 %v519_v12, %v519_v12  ;;  %v557_v26 = vunpack.c.l.b16 %v660_v13 }
 0x1a0   : > { %v501_v21 = vadd.f32 %v500_v15, %v499_v7  ;;  %v515_v22 = vadd.f32 %v514_v17, %v513_v9  ;;  %v521_v23 = vmul.f32 0.5, %v494_v14  ;;  %v523_v24 = vmul.f32 0.5, %v508_v16 }
 0x1a1   : > { %v663_v25 = vpack.c.bf16 %v520_v18, %v520_v18  ;;  %v558_v27 = vunpack.c.l.b16 %v661_v19  ;;  %v559_v28 = vunpack.c.l.b16 %v662_v20 }
 0x1a2   : > { %v522_v29 = vmul.f32 0.5, %v501_v21  ;;  %v524_v30 = vmul.f32 0.5, %v515_v22  ;;  %v664_v31 = vpack.c.bf16 %v521_v23, %v521_v23  ;;  %v666_v34 = vpack.c.bf16 %v523_v24, %v523_v24 }
 0x1a3   : > { %v560_v32 = vunpack.c.l.b16 %v663_v25  ;;  %v566_v33 = vsel %vm565_vm11, %v558_v27, %v557_v26 }
 0x1a4   : > { %v568_v35 = vsel %vm567_vm12, %v559_v28, %v566_v33  ;;  %v665_v36 = vpack.c.bf16 %v522_v29, %v522_v29  ;;  %v667_v37 = vpack.c.bf16 %v524_v30, %v524_v30  ;;  %v561_v38 = vunpack.c.l.b16 %v664_v31 }
 0x1a5   : > { %v570_v39 = vsel %vm569_vm13, %v560_v32, %v568_v35  ;;  %v563_v42 = vunpack.c.l.b16 %v666_v34 }
 0x1a6   : > { %v562_v40 = vunpack.c.l.b16 %v665_v36  ;;  %v572_v41 = vsel %vm571_vm14, %v561_v38, %v570_v39  ;;  %v564_v43 = vunpack.c.l.b16 %v667_v37 }
 0x1a8   : > { %v574_v44 = vsel %vm573_vm15, %v562_v40, %v572_v41 }
 0x1a9   : > { %v576_v45 = vsel %vm575_vm0, %v563_v42, %v574_v44 }
 0x1aa   : > { %v578_v46 = vsel %vm577_vm1, %v564_v43, %v576_v45 }
 0x1ab   : > { %v579_v47 = vpack.c.b16 %v578_v46, %v578_v46 }
 0x1ad   : > { %582 = vst.msk [vmem:[%s222_s12] sm:$0xf] %vm581_vm2, %v579_v47 }
 0x1ae PF: > { %s15_s18 = sadd.s32 1, %s718_s18  }
 0x1af   : > { %p12_p4 = scmp.ge.s32.totalorder %s15_s18, 4  }
 0x1b1   :  { %14 = sbr.rel (!%p12_p4) target bundleno = 1 (0x1), region = 70 }

// kernel: _lambda_.7
= control target key start
LH: loop header
LB: loop body
LE: loop exit
PB: predicated region body
PF: predicated region fallthrough
CT: control target
= control target key end

     0   :  { %s672_s18 = smov 0   ;;  %s726_s0 = inlined_call_operand.vmem [shape: bf16[2,8,8], index: 0, kind: input, shape index: {}]   ;;  %s727_s1 = inlined_call_operand.vmem [shape: bf16[24,16], index: 1, kind: input, shape index: {}]   ;;  %s728_s2 = inlined_call_operand.vmem [shape: f32[1,16], index: 2, kind: input, shape index: {}, may-alias: {2,4}]   ;;  %s729_s3 = inlined_call_operand.vmem [shape: bf16[8,16], index: 3, kind: input, shape index: {}]   ;;  %s730_s4 = inlined_call_operand.vmem [shape: f32[1,16], index: 4, kind: input, shape index: {}, may-alias: {2,4}]   ;;  %s731_s5 = inlined_call_operand.vmem [shape: bf16[2,4,16], index: 5, kind: output, shape index: {}]  }
   0x1 LB: > { %s578_s19 = sadd.s32 4294967295, %s635_s18   ;;  %p582_p0 = scmp.ge.s32.totalorder %s635_s18, 1  ;;  %s635_s18 = sphi %s672_s18, %s15_s18  }
   0x2   : > { %p186_p1 = scmp.lt.s32.totalorder %s635_s18, 3 }
   0x4   : > { %p187_p2 = pnand %p582_p0, %p186_p1 }
   0x5   : > { %p212_p3 = scmp.lt.s32.totalorder (!%p187_p2), %s578_s19, 1  ;;  %v637_v0 = vmov (!%p187_p2), 0.0   ;;  %v625_v1 = vld [vmem:[%s727_s1] sm:$0xff] (!%p187_p2)   ;;  %v626_v2 = vld [vmem:[%s727_s1 + $0x8] ss:$0 sps:$4 sm:$0xff] (!%p187_p2)   ;;  %vm273_vm0 = vcmask (!%p187_p2), 1043456   ;;  %v387_v39 = vlaneseq (!%p187_p2) }
   0x6   : > { %190 = sbr.rel (%p187_p2) target bundleno = 429 (0x1ad), region = 40  ;;  %598 = vmatprep.subr.bf16.mxu0 (!%p187_p2), %v637_v0  ;;  %606 = vmatprep.subr.bf16.mxu1 (!%p187_p2), %v637_v0  ;;  %v275_v3 = vsel (!%p187_p2), %vm273_vm0, %v626_v2, 0  ;;  %vm226_vm1 = vcmask (!%p187_p2), 1040384   ;;  %vm638_vm2 = vmmov (!%p187_p2), 0   ;;  %v326_v7 = vld [vmem:[%s729_s3] sm:$0xf] (!%p187_p2) }
   0x7   : > { %599 = vmatpush3.bf16.msra.mxu0 (!%p187_p2), %v625_v1  ;;  %602 = vmatprep.mubr.msk.bf16.mxu0 (!%p187_p2), %vm638_vm2, %v637_v0  ;;  %v331_v8 = vsel (!%p187_p2), %vm273_vm0, %v326_v7, 0  ;;  %vm231_vm3 = vcmask (!%p187_p2), 1046528   ;;  %vm238_vm4 = vcmask (!%p187_p2), 1045504   ;;  %vm245_vm5 = vcmask (!%p187_p2), 64512   ;;  %s639_s30 = smov (!%p187_p2), 8   ;;  %s640_s6 = smov (!%p187_p2), 16  }
   0x8   : > { %600 = vmatprep.subr.bf16.mxu0 (!%p187_p2), %v637_v0  ;;  %608 = vmatprep.mubr.msk.bf16.mxu1 (!%p187_p2), %vm638_vm2, %v637_v0  ;;  %vm247_vm6 = vcmask (!%p187_p2), 130048   ;;  %vm269_vm7 = vcmask (!%p187_p2), 195584   ;;  %v585_v26 = vld [vmem:[%s728_s2] ss:$0 sm:$0xff] (!%p187_p2)  ;;  %v641_v37 = vmov (!%p187_p2), 1983009808  }
   0x9   : > { %607 = vmatpush3.bf16.msra.mxu1 (!%p187_p2), %v331_v8  ;;  %v385_v38 = vunpack.c.l.s4 (!%p187_p2), %v641_v37  ;;  %v388_v44 = vshrl.u32 (!%p187_p2), %v387_v39, 7  ;;  %v590_v46 = vld [vmem:[%s730_s4] ss:$0 sm:$0xff] (!%p187_p2)  ;;  %vm404_vm8 = vcmask (!%p187_p2), 123904   ;;  %vm507_vm9 = vcmask (!%p187_p2), 1041409  }
   0xa   : > { %vm510_vm10 = vcmask (!%p187_p2), 1042434   ;;  %vm513_vm11 = vcmask (!%p187_p2), 1043459  }
   0xb   : > { %601 = vmatpush3.bf16.msra.mxu0 (!%p187_p2), %v275_v3  ;;  %v386_v43 = vunpack.c.0.s8 (!%p187_p2), %v385_v38 }
   0xd   : > { %s733_s19 = smov (!%p212_p3, %s578_s19), 1  ;;  %v701_v48 = vsub.s32 %v386_v43, %v388_v44 }
   0xe   : > { %s583_s24 = sshll.u32 %s733_s19, 2  ;;  %s584_s11 = sshll.u32 %s733_s19, 1 }
   0xf   : > { %s215_s27 = scalar_lea.vmem %s726_s0, %s583_s24  ;;  %s219_s14 = scalar_lea.vmem %s731_s5, %s584_s11 }
  0x10   : > { %v221_v4 = vld [vmem:[%s215_s27] sm:$0xf] }
  0x11   : > { %v222_v5 = vunpack.c.l.bf16 %v221_v4  ;;  %609 = vmatmul.mubr.msk.bf16.vlgmr.msra.gmra.mrb[0].mxu1 %vm245_vm5, %v221_v4 }
  0x13   : > { %v224_v6 = vrot.slane %v222_v5, 7 }
  0x15   : > { %v227_v9 = vsel %vm226_vm1, 0.0, %v224_v6  ;;  %v228_v10 = vsel %vm226_vm1, %v224_v6, 0.0 }
  0x16   : > { %v232_v11 = vrot.slane %v227_v9, 1  ;;  %v233_v12 = vrot.slane %v228_v10, 1  ;;  %v239_v13 = vrot.slane %v227_v9, 2  ;;  %v240_v14 = vrot.slane %v228_v10, 2 }
  0x18   : > { %v234_v15 = vsel %vm231_vm3, %v232_v11, %v233_v12  ;;  %v241_v16 = vsel %vm238_vm4, %v239_v13, %v240_v14 }
  0x19   : > { %235 = vrot.lane.b32.xlu0 %v234_v15, %s639_s30 }
  0x1d   : > { %242 = vrot.lane.b32.xlu0 %v241_v16, %s640_s6 }
  0x8b   : > { %v236_v17 = vpop.permute.xlu0 %235 }
  0x8c   : > { %v246_v18 = vsel %vm245_vm5, %v227_v9, %v236_v17 }
  0x8f   : > { %v243_v19 = vpop.permute.xlu0 %242 }
  0x90   : > { %v248_v20 = vsel %vm247_vm6, %v246_v18, %v243_v19 }
  0x91   : > { %v249_v21 = vpack.c.bf16 %v248_v20, %v248_v20 }
  0x93   : > { %603 = vmatmul.mubr.msk.bf16.vlgmr.msra.gmra.mrb[0].mxu0 %vm269_vm7, %v249_v21 }
  0xe4   : > { %v367_v22 = vpop.f32.mrb[0].mxu1 }
  0xe5   : > { %v610_v23 = vpop.f32.mrb[1].mxu1 }
  0xe6   : > { %v370_v24 = vpop.f32.mrb[2].mxu1 }
  0xe7   : > { %v611_v25 = vpop.f32.mrb[3].mxu1 }
 0x166   : > { %v311_v27 = vpop.f32.mrb[0].mxu0 }
 0x167   : > { %v312_v28 = vadd.f32 %v585_v26, %v311_v27  ;;  %v604_v29 = vpop.f32.mrb[1].mxu0 }
 0x168   : > { %v314_v30 = vpop.f32.mrb[2].mxu0 }
 0x169   : > { %v317_v31 = vmul.f32 %v312_v28, %v312_v28  ;;  %v605_v32 = vpop.f32.mrb[3].mxu0 }
 0x16b   : > { %v318_v33 = vmul.f32 %v317_v31, %v312_v28 }
 0x16d   : > { %v319_v34 = vmul.f32 0.044715, %v318_v33 }
 0x16f   : > { %v320_v35 = vadd.f32 %v319_v34, %v312_v28 }
 0x171   : > { %v321_v36 = vmul.f32 0.7978846, %v320_v35 }
 0x173   : > { %627 = vtanh.f32 %v321_v36 }
 0x17d   : > { %v628_v40 = vpop.eup %627 }
 0x17e   : > { %v323_v41 = vadd.f32 1.0, %v628_v40 }
 0x180   : > { %v324_v42 = vmul.f32 0.5, %v323_v41 }
 0x182   : > { %v325_v45 = vmul.f32 %v324_v42, %v312_v28 }
 0x184   : > { %v373_v47 = vadd.f32 %v367_v22, %v325_v45 }
 0x186   : > { %v381_v49 = vadd.f32 %v590_v46, %v373_v47 }
 0x188   : > { %v383_v50 = vcombine.high %v381_v49, %v381_v49  ;;  %v390_v51 = vrot.slane %v381_v49, %v701_v48 }
 0x18a   : > { %v397_v52 = vrot.slane %v383_v50, %v701_v48  ;;  %v398_v53 = vcombine.high %v390_v51, %v390_v51  ;;  %v405_v54 = vsel %vm404_vm8, %v390_v51, 0.0 }
 0x18b   : > { %v406_v55 = vrot.slane %v405_v54, 4 }
 0x18c   : > { %v399_v56 = vcombine.high %v397_v52, %v397_v52  ;;  %v412_v57 = vsel %vm404_vm8, %v398_v53, 0.0  ;;  %v419_v58 = vsel %vm404_vm8, %v397_v52, 0.0 }
 0x18d   : > { %v407_v59 = vadd.f32 %v406_v55, %v405_v54  ;;  %v413_v60 = vrot.slane %v412_v57, 4  ;;  %v420_v61 = vrot.slane %v419_v58, 4 }
 0x18e   : > { %v426_v62 = vsel %vm404_vm8, %v399_v56, 0.0 }
 0x18f   : > { %v408_v63 = vrot.slane %v407_v59, 2  ;;  %v414_v0 = vadd.f32 %v413_v60, %v412_v57  ;;  %v421_v1 = vadd.f32 %v420_v61, %v419_v58  ;;  %v427_v2 = vrot.slane %v426_v62, 4 }
 0x191   : > { %v409_v3 = vadd.f32 %v408_v63, %v407_v59  ;;  %v415_v4 = vrot.slane %v414_v0, 2  ;;  %v422_v5 = vrot.slane %v421_v1, 2  ;;  %v428_v6 = vadd.f32 %v427_v2, %v426_v62 }
 0x193   : > { %v410_v7 = vrot.slane %v409_v3, 1  ;;  %v416_v8 = vadd.f32 %v415_v4, %v414_v0  ;;  %v423_v9 = vadd.f32 %v422_v5, %v421_v1  ;;  %v429_v10 = vrot.slane %v428_v6, 2 }
 0x195   : > { %v411_v11 = vadd.f32 %v410_v7, %v409_v3  ;;  %v417_v12 = vrot.slane %v416_v8, 1  ;;  %v424_v13 = vrot.slane %v423_v9, 1  ;;  %v430_v14 = vadd.f32 %v429_v10, %v428_v6 }
 0x197   : > { %v418_v15 = vadd.f32 %v417_v12, %v416_v8  ;;  %v425_v16 = vadd.f32 %v424_v13, %v423_v9  ;;  %v431_v17 = vrot.slane %v430_v14, 1  ;;  %v434_v18 = vmul.f32 0.5, %v411_v11 }
 0x199   : > { %v432_v19 = vadd.f32 %v431_v17, %v430_v14  ;;  %v435_v20 = vmul.f32 0.5, %v418_v15  ;;  %v436_v21 = vmul.f32 0.5, %v425_v16  ;;  %v438_v22 = vpack.c.bf16 %v434_v18, %v434_v18 }
 0x19b   : > { %v437_v23 = vmul.f32 0.5, %v432_v19  ;;  %v439_v24 = vpack.c.bf16 %v435_v20, %v435_v20  ;;  %v440_v25 = vpack.c.bf16 %v436_v21, %v436_v21  ;;  %v452_v26 = vrot.slane %v438_v22, %v701_v48 }
 0x19d   : > { %v441_v27 = vpack.c.bf16 %v437_v23, %v437_v23  ;;  %v459_v28 = vrot.slane %v439_v24, %v701_v48  ;;  %v466_v29 = vrot.slane %v440_v25, %v701_v48  ;;  %v480_v31 = vrot.slane %v452_v26, %v701_v48 }
 0x19f   : > { %v473_v30 = vrot.slane %v441_v27, %v701_v48  ;;  %v487_v32 = vrot.slane %v459_v28, %v701_v48  ;;  %v494_v33 = vrot.slane %v466_v29, %v701_v48  ;;  %v502_v37 = vunpack.c.l.b16 %v480_v31 }
 0x1a1   : > { %v501_v34 = vrot.slane %v473_v30, %v701_v48  ;;  %v503_v35 = vunpack.c.l.b16 %v487_v32  ;;  %v504_v36 = vunpack.c.l.b16 %v494_v33 }
 0x1a3   : > { %v505_v38 = vunpack.c.l.b16 %v501_v34  ;;  %v506_v39 = vrot.slane %v503_v35, 7  ;;  %v509_v40 = vrot.slane %v504_v36, 6 }
 0x1a5   : > { %v508_v41 = vsel %vm507_vm9, %v506_v39, %v502_v37  ;;  %v512_v42 = vrot.slane %v505_v38, 5 }
 0x1a6   : > { %v511_v43 = vsel %vm510_vm10, %v509_v40, %v508_v41 }
 0x1a7   : > { %v514_v44 = vsel %vm513_vm11, %v512_v42, %v511_v43 }
 0x1a8   : > { %v515_v45 = vpack.c.b16 %v514_v44, %v514_v44 }
 0x1aa   : > { %v522_v46 = vrot.slane %v515_v45, %v701_v48 }
 0x1ac   : > { %524 = vst.msk [vmem:[%s219_s14] sm:$0x3] %vm404_vm8, %v522_v46 }
 0x1ad PF: > { %s15_s18 = sadd.s32 1, %s635_s18  }
 0x1ae   : > { %p12_p4 = scmp.ge.s32.totalorder %s15_s18, 4  }
 0x1b0   :  { %14 = sbr.rel (!%p12_p4) target bundleno = 1 (0x1), region = 70 }

// kernel: _lambda_.8
= control target key start
LH: loop header
LB: loop body
LE: loop exit
PB: predicated region body
PF: predicated region fallthrough
CT: control target
= control target key end

     0   :  { %s507_s21 = smov 0   ;;  %s547_s0 = inlined_call_operand.vmem [shape: bf16[2,4,16], index: 0, kind: input, shape index: {}]   ;;  %s548_s1 = inlined_call_operand.vmem [shape: f32[2,1,16], index: 1, kind: input, shape index: {}]   ;;  %s549_s2 = inlined_call_operand.vmem [shape: bf16[16,16], index: 2, kind: input, shape index: {}]   ;;  %s550_s3 = inlined_call_operand.vmem [shape: f32[1,16], index: 3, kind: input, shape index: {}, may-alias: {3,5}]   ;;  %s551_s4 = inlined_call_operand.vmem [shape: f32[1,16], index: 4, kind: input, shape index: {}]   ;;  %s552_s5 = inlined_call_operand.vmem [shape: f32[1,16], index: 5, kind: input, shape index: {}, may-alias: {3,5}]   ;;  %s553_s6 = inlined_call_operand.vmem [shape: bf16[2,4,16], index: 6, kind: output, shape index: {}]  }
   0x1 LB: > { %s426_s22 = sadd.s32 4294967295, %s468_s21   ;;  %p430_p0 = scmp.ge.s32.totalorder %s468_s21, 1  ;;  %s468_s21 = sphi %s507_s21, %s16_s21  }
   0x2   : > { %p219_p1 = scmp.lt.s32.totalorder %s468_s21, 3 }
   0x4   : > { %p220_p2 = pnand %p430_p0, %p219_p1 }
   0x5   : > { %v459_v0 = vld [vmem:[%s549_s2] sm:$0xff] (!%p220_p2)   ;;  %v470_v1 = vmov (!%p220_p2), 0.0   ;;  %p250_p3 = scmp.lt.s32.totalorder (!%p220_p2), %s426_s22, 1  ;;  %vm471_vm0 = vmmov (!%p220_p2), 0   ;;  %vm278_vm1 = vcmask (!%p220_p2), 130048   ;;  %vm332_vm2 = vcmask (!%p220_p2), 125952  }
   0x6   : > { %223 = sbr.rel (%p220_p2) target bundleno = 549 (0x225), region = 44  ;;  %443 = vmatprep.subr.bf16.mxu0 (!%p220_p2), %v470_v1  ;;  %445 = vmatprep.mubr.msk.bf16.mxu0 (!%p220_p2), %vm471_vm0, %v470_v1  ;;  %v436_v5 = vld [vmem:[%s550_s3] ss:$0 sm:$0xff] (!%p220_p2)  ;;  %vm362_vm3 = vcmask (!%p220_p2), 123904  }
   0x7   : > { %444 = vmatpush3.bf16.msra.mxu0 (!%p220_p2), %v459_v0  ;;  %v437_v21 = vld [vmem:[%s551_s4] ss:$0 sm:$0xff] (!%p220_p2) }
   0x8   : > { %v438_v23 = vld [vmem:[%s552_s5] ss:$0 sm:$0xff] (!%p220_p2) }
   0xd   : > { %s555_s22 = smov (!%p250_p3, %s426_s22), 1 }
   0xe   : > { %s431_s25 = sshll.u32 %s555_s22, 1  ;;  %s256_s7 = scalar_lea.vmem %s548_s1, %s555_s22 }
   0xf   : > { %s253_s28 = scalar_lea.vmem %s547_s0, %s431_s25  ;;  %v433_v3 = vld [vmem:[%s256_s7] ss:$0 sm:$0xff]  ;;  %s260_s16 = scalar_lea.vmem %s553_s6, %s431_s25 }
  0x10   : > { %v262_v2 = vld [vmem:[%s253_s28] sm:$0x3] }
  0x11   : > { %446 = vmatmul.mubr.msk.bf16.vlgmr.msra.gmra.mrb[0].mxu0 %vm278_vm1, %v262_v2 }
  0xe4   : > { %v316_v4 = vpop.f32.mrb[0].mxu0 }
  0xe5   : > { %v317_v6 = vadd.f32 %v433_v3, %v316_v4  ;;  %v447_v7 = vpop.f32.mrb[1].mxu0 }
  0xe6   : > { %v319_v8 = vpop.f32.mrb[2].mxu0 }
  0xe7   : > { %v448_v9 = vpop.f32.mrb[3].mxu0  ;;  %v329_v10 = vadd.f32 %v436_v5, %v317_v6 }
  0xe9   : > { %v333_v11 = vsel %vm332_vm2, %v329_v10, 0.0 }
  0xea   : > { %334 = vadd.xlane.f32.xlu0 %v333_v11 }
 0x177   : > { %v335_v12 = vpop.xlane.xlu0 %334 }
 0x178   : > { %v337_v13 = vmul.f32 0.0625, %v335_v12 }
 0x17a   : > { %v338_v14 = vsub.f32 %v329_v10, %v337_v13 }
 0x17c   : > { %v339_v15 = vmul.f32 %v338_v14, %v338_v14 }
 0x17e   : > { %v340_v16 = vsel %vm332_vm2, %v339_v15, 0.0 }
 0x17f   : > { %341 = vadd.xlane.f32.xlu0 %v340_v16 }
 0x20c   : > { %v342_v17 = vpop.xlane.xlu0 %341 }
 0x20d   : > { %v343_v18 = vmul.f32 0.0625, %v342_v17 }
 0x20f   : > { %v344_v19 = vadd.f32 1e-05, %v343_v18 }
 0x211   : > { %460 = vrsqrt.f32 %v344_v19 }
 0x21b   : > { %v461_v20 = vpop.eup %460 }
 0x21c   : > { %v346_v22 = vmul.f32 %v461_v20, %v338_v14 }
 0x21e   : > { %v353_v24 = vmul.f32 %v437_v21, %v346_v22 }
 0x220   : > { %v360_v25 = vadd.f32 %v438_v23, %v353_v24 }
 0x222   : > { %v361_v26 = vpack.c.bf16 %v360_v25, %v360_v25 }
 0x224   : > { %363 = vst.msk [vmem:[%s260_s16] sm:$0x3] %vm362_vm3, %v361_v26 }
 0x225 PF: > { %s16_s21 = sadd.s32 1, %s468_s21  }
 0x226   : > { %p13_p4 = scmp.ge.s32.totalorder %s16_s21, 4  }
 0x228   :  { %15 = sbr.rel (!%p13_p4) target bundleno = 1 (0x1), region = 77 }

// kernel: _lambda_.11
= control target key start
LH: loop header
LB: loop body
LE: loop exit
PB: predicated region body
PF: predicated region fallthrough
CT: control target
= control target key end

     0   :  { %s828_s0 = inlined_call_operand.vmem [shape: bf16[2,4,16], index: 0, kind: input, shape index: {}]   ;;  %s829_s1 = inlined_call_operand.vmem [shape: f32[1,16], index: 1, kind: input, shape index: {}]   ;;  %s830_s2 = inlined_call_operand.<no memory space> [shape: f32[1,1], index: 2, kind: input, shape index: {}]   ;;  %s831_s3 = inlined_call_operand.vmem [shape: bf16[16,16], index: 3, kind: input, shape index: {}]   ;;  %s832_s4 = inlined_call_operand.vmem [shape: f32[1,16], index: 4, kind: input, shape index: {}, may-alias: {4,6}]   ;;  %s833_s5 = inlined_call_operand.vmem [shape: bf16[16,16], index: 5, kind: input, shape index: {}]   ;;  %s834_s6 = inlined_call_operand.vmem [shape: f32[1,16], index: 6, kind: input, shape index: {}, may-alias: {4,6}]   ;;  %s835_s7 = inlined_call_operand.hbm [shape: f32[2,1,16], index: 7, kind: output, shape index: {}]  }
   0x1   :  { %v12_v0 = vstv %s830_s2 }
   0x2   :  { %13 = vst [vmem:[#allocation2] sm:$0x1] %v12_v0 }
   0x3   :  { %14 = vsyncpa [#allocation4], 0 }
   0x4   :  { %16 = vsyncpa [#allocation4 + $0x1], 0  ;;  %s709_s26 = smov 0   ;;  %s711_s27 = smov 0  }
   0x5   :  { %s713_s28 = smov 0   ;;  %s715_s29 = smov 0  }
   0x6 LB: > { %s730_s2 = sadd.s32 4294967295, %s660_s29   ;;  %s517_s30 = sadd.s32 4294967294, %s660_s29   ;;  %s660_s29 = sphi %s715_s29, %s841_s29   ;;  %s656_s28 = sphi %s713_s28, %s840_s28   ;;  %s652_s27 = sphi %s711_s27, %s839_s27   ;;  %s648_s26 = sphi %s709_s26, %s838_s26  }
   0x7   : > { %s734_s8 = sadd.s32 1, %s660_s29   ;;  %s181_s9 = sadd.s32 1, %s656_s28 }
   0x8   : > { %s178_s10 = ssub.s32 %s660_s29, %s734_s8  ;;  %p191_p0 = scmp.ne.s32.totalorder %s656_s28, %s652_s27 }
   0x9   : > { %p179_p1 = scmp.eq.s32.totalorder %s178_s10, 0  ;;  %p192_p2 = scmp.eq.s32.totalorder %s730_s2, 1 }
   0xa   : > { %p197_p3 = scmp.ne.s32.totalorder %s652_s27, %s648_s26  ;;  %p198_p4 = scmp.eq.s32.totalorder %s517_s30, 1 }
   0xb   : > { %s745_s11 = scalar_select %p179_p1, %s656_s28, %s181_s9  }
   0xc   : > { %p747_p5 = por %p192_p2, %p191_p0  ;;  %p751_p6 = por %p198_p4, %p197_p3 }
   0xd   : > { %p520_p7 = scmp.ge.s32.totalorder %s660_s29, 1  ;;  %p241_p8 = scmp.lt.s32.totalorder %s660_s29, 3 }
   0xf   : > { %p242_p9 = pnand %p520_p7, %p241_p8 }
  0x10   : > { %p271_p10 = scmp.lt.s32.totalorder (!%p242_p9), %s730_s2, 1  ;;  %v522_v2 = vld [vmem:[%s829_s1] ss:$0 sm:$0xff] (!%p242_p9)  ;;  %vm286_vm0 = vcmask (!%p242_p9), 125952   ;;  %v662_v6 = vmov (!%p242_p9), 0   ;;  %vm298_vm1 = vcmask (!%p242_p9), 3072  }
  0x11   : > { %245 = sbr.rel (%p242_p9) target bundleno = 848 (0x350), region = 48  ;;  %589 = vset.pattern.permute.xlu0 (!%p242_p9), %v662_v6  ;;  %v523_v7 = vld [vmem:[#allocation2] ss:$0 sm:$0xff] (!%p242_p9)  ;;  %v663_v30 = vmov (!%p242_p9), 0.0   ;;  %vm664_vm2 = vmmov (!%p242_p9), 0   ;;  %vm341_vm3 = vcmask (!%p242_p9), 130048  }
  0x12   : > { %v590_v29 = vld [vmem:[%s831_s3] sm:$0xff] (!%p242_p9)   ;;  %535 = vmatprep.subr.bf16.mxu0 (!%p242_p9), %v663_v30  ;;  %541 = vmatprep.subr.bf16.mxu1 (!%p242_p9), %v663_v30  ;;  %s269_s9 = sand.u32 (!%p242_p9), 1, %s652_s27   ;;  %vm447_vm4 = vcmask (!%p242_p9), 122880   ;;  %s665_s22 = smov (!%p242_p9), [#allocation3]  }
  0x13   : > { %536 = vmatpush3.bf16.msra.mxu0 (!%p242_p9), %v590_v29  ;;  %537 = vmatprep.mubr.msk.bf16.mxu0 (!%p242_p9), %vm664_vm2, %v663_v30  ;;  %v591_v41 = vld [vmem:[%s833_s5] sm:$0xff] (!%p242_p9)   ;;  %s270_s16 = scalar_lea.vmem (!%p242_p9), [#allocation3], %s269_s9  ;;  %s602_s23 = sshll.u32 (!%p242_p9), %s665_s22, 4  ;;  %s603_s23 = int_to_ptr.vmem [resolvable:$false] %s602_s23 }
  0x14   : > { %543 = vmatprep.mubr.msk.bf16.mxu1 (!%p242_p9), %vm664_vm2, %v663_v30  ;;  %542 = vmatpush3.bf16.msra.mxu1 (!%p242_p9), %v591_v41  ;;  %v334_v42 = vld [vmem:[%s832_s4] sm:$0x1] (!%p242_p9)  ;;  %s462_s17 = sshll.u32 (!%p242_p9), %s270_s16, 4  ;;  %s604_s24 = scalar_lea.vmem (!%p242_p9), %s603_s23, 32  ;;  %s788_s17 = int_to_ptr.vmem [resolvable:$true] %s462_s17 }
  0x15   : > { %v397_v58 = vld [vmem:[%s834_s6] sm:$0x1] (!%p242_p9)  ;;  %s598_s21 = scalar_lea.vmem (!%p242_p9), %s788_s17, 16  ;;  %p605_p0 = scmp.lt.s32.totalorder (!%p242_p9), %s788_s17, %s603_s23 }
  0x16   : > { %p599_p11 = scmp.ne.s32.totalorder (!%p242_p9), %s788_s17, %s598_s21  ;;  %p606_p1 = scmp.lt.s32.totalorder (!%p242_p9), %s604_s24, %s598_s21 }
  0x18   : > { %s272_s14 = scalar_select %p271_p10, %s730_s2, 1 }
  0x19   : > { %p600_p12 = pnand %p599_p11, %p747_p5  ;;  %p607_p2 = por %p606_p1, %p605_p0 }
  0x1a   : > { %s521_s15 = sshll.u32 %s272_s14, 1 }
  0x1b   : > { %s274_s18 = scalar_lea.vmem %s828_s0, %s521_s15  ;;  %s528_s15 = sshll.u32 %s730_s2, 4 }
  0x1c   : > { %v276_v1 = vld [vmem:[%s274_s18] sm:$0x3]  ;;  %s786_s20 = scalar_lea.hbm %s835_s7, %s528_s15  ;;  %s450_s2 = scalar_lea.sflag [#allocation4], %s269_s9 }
  0x1d   : > { %v277_v3 = vunpack.c.l.bf16 %v276_v1  ;;  %p601_p13 = pneg %p600_p12 }
  0x1f   : > { %v285_v4 = vmul.f32 %v522_v2, %v277_v3  ;;  %p608_p3 = pnand %p607_p2, %p601_p13 }
  0x21   : > { %v287_v5 = vsel %vm286_vm0, %v285_v4, 0.0 }
  0x22   : > { %288 = vadd.xlane.f32.xlu0 %v287_v5 }
  0xaf   : > { %v289_v8 = vpop.xlane.xlu0 %288 }
  0xb0   : > { %v297_v9 = vadd.f32 %v523_v7, %v289_v8 }
  0xb2   : > { %v299_v10 = vsel %vm298_vm1, %v297_v9, -inf }
  0xb3   : > { %v300_v11 = vrot.slane %v299_v10, 4 }
  0xb5   : > { %v301_v12 = vmax.f32 %v299_v10, %v300_v11 }
  0xb7   : > { %v302_v13 = vrot.slane %v301_v12, 2 }
  0xb9   : > { %v303_v14 = vmax.f32 %v301_v12, %v302_v13 }
  0xbb   : > { %v304_v15 = vrot.slane %v303_v14, 1 }
  0xbd   : > { %v305_v16 = vmax.f32 %v303_v14, %v304_v15 }
  0xbf   : > { %v306_v17 = vsub.f32 %v297_v9, %v305_v16 }
  0xc1   : > { %v307_v18 = vmul.f32 1.442695, %v306_v17 }
  0xc3   : > { %592 = vpow2.f32 %v307_v18 }
  0xcd   : > { %v593_v19 = vpop.eup %592 }
  0xce   : > { %v309_v20 = vsel %vm298_vm1, %v593_v19, 0.0 }
  0xcf   : > { %v310_v21 = vrot.slane %v309_v20, 4 }
  0xd1   : > { %v311_v22 = vadd.f32 %v310_v21, %v309_v20 }
  0xd3   : > { %v312_v23 = vrot.slane %v311_v22, 2 }
  0xd5   : > { %v313_v24 = vadd.f32 %v312_v23, %v311_v22 }
  0xd7   : > { %v314_v25 = vrot.slane %v313_v24, 1 }
  0xd9   : > { %v315_v26 = vadd.f32 %v314_v25, %v313_v24 }
  0xdb   : > { %594 = vrcp.f32 %v315_v26 }
  0xe5   : > { %v595_v27 = vpop.eup %594 }
  0xe6   : > { %v317_v28 = vmul.f32 %v595_v27, %v593_v19 }
  0xe8   : > { %320 = vperm.xlu0 %589, %v317_v28  }
 0x167   : > { %v321_v31 = vpop.permute.xlu0 %320 }
 0x168   : > { %v323_v32 = vmul.f32 %v321_v31, %v277_v3 }
 0x16a   : > { %v324_v33 = vsel %vm286_vm0, %v323_v32, 0.0 }
 0x16b   : > { %v325_v34 = vrot.slane %v324_v33, 4 }
 0x16d   : > { %v326_v35 = vadd.f32 %v325_v34, %v324_v33 }
 0x16f   : > { %v327_v36 = vrot.slane %v326_v35, 2 }
 0x171   : > { %v328_v37 = vadd.f32 %v327_v36, %v326_v35 }
 0x173   : > { %v329_v38 = vrot.slane %v328_v37, 1 }
 0x175   : > { %v330_v39 = vadd.f32 %v329_v38, %v328_v37 }
 0x177   : > { %v331_v40 = vpack.c.bf16 %v330_v39, %v330_v39 }
 0x179   : > { %538 = vmatmul.mubr.msk.bf16.vlgmr.msra.gmra.mrb[0].mxu0 %vm341_vm3, %v331_v40 }
 0x24c   : > { %v379_v43 = vpop.f32.mrb[0].mxu0 }
 0x24d   : > { %v380_v44 = vadd.f32 %v379_v43, %v334_v42  ;;  %v539_v45 = vpop.f32.mrb[1].mxu0 }
 0x24e   : > { %v382_v46 = vpop.f32.mrb[2].mxu0 }
 0x24f   : > { %v385_v47 = vmul.f32 %v380_v44, %v380_v44  ;;  %v540_v48 = vpop.f32.mrb[3].mxu0 }
 0x251   : > { %v386_v49 = vmul.f32 %v385_v47, %v380_v44 }
 0x253   : > { %v387_v50 = vmul.f32 0.044715, %v386_v49 }
 0x255   : > { %v388_v51 = vadd.f32 %v387_v50, %v380_v44 }
 0x257   : > { %v389_v52 = vmul.f32 0.7978846, %v388_v51 }
 0x259   : > { %596 = vtanh.f32 %v389_v52 }
 0x263   : > { %v597_v53 = vpop.eup %596 }
 0x264   : > { %v391_v54 = vadd.f32 1.0, %v597_v53 }
 0x266   : > { %v392_v55 = vmul.f32 0.5, %v391_v54 }
 0x268   : > { %v393_v56 = vmul.f32 %v392_v55, %v380_v44 }
 0x26a   : > { %v394_v57 = vpack.c.bf16 %v393_v56, %v393_v56 }
 0x26c   : > { %544 = vmatmul.mubr.msk.bf16.vlgmr.msra.gmra.mrb[0].mxu1 %vm341_vm3, %v394_v57 }
 0x33f   : > { %v441_v59 = vpop.f32.mrb[0].mxu1 }
 0x340   : > { %v442_v60 = vadd.f32 %v441_v59, %v397_v58  ;;  %v545_v61 = vpop.f32.mrb[1].mxu1 }
 0x341   : > { %v444_v62 = vpop.f32.mrb[2].mxu1 }
 0x342   : > { %v546_v63 = vpop.f32.mrb[3].mxu1  ;;  %448 = vst.msk [vmem:[%s270_s16] sm:$0x1] %vm447_vm4, %v442_v60 }
 0x343   : > { %611 = shalt.err (!%p608_p3)
}
 0x344   : > { %s612_s25 = scalar_lea.hbm %s786_s20, 16  ;;  %s616_s10 = scalar_lea.hbm %s835_s7, 32 }
 0x345   : > { %p613_p4 = scmp.ne.s32.totalorder %s786_s20, %s612_s25  ;;  %p617_p9 = scmp.lt.u32.totalorder %s786_s20, %s835_s7 }
 0x346   : > { %p618_p10 = scmp.lt.u32.totalorder %s616_s10, %s612_s25  ;;  %p620_p12 = scmp.lt.u32.totalorder %s612_s25, %s786_s20 }
 0x347   : > { %p614_p7 = pnand %p613_p4, %p747_p5 }
 0x348   : > { %p619_p11 = por %p618_p10, %p617_p9 }
 0x349   : > { %p615_p8 = pneg %p614_p7 }
 0x34a   : > { %p621_p13 = por %p620_p12, %p619_p11 }
 0x34c   : > { %p622_p0 = pnand %p621_p13, %p615_p8 }
 0x34e   : > { %625 = shalt.err (!%p622_p0)
}
 0x34f   : > { %547 = dma.vmem_to_hbm [thread:$0]  (%p747_p5), %s788_s17, 16, %s786_s20, %s450_s2  }
 0x350 PF: > { %p553_p1 = scmp.ge.s32.totalorder %s660_s29, 2  ;;  %s474_s16 = sand.u32 1, %s648_s26  }
 0x351   : > { %s475_s18 = scalar_lea.sflag [#allocation4], %s474_s16 }
 0x352   : > { %p550_p2 = pnand %p553_p1, %p751_p6 }
 0x354   : > { %643 = dma.done.wait (!%p550_p2), %s475_s18, 16  }
 0x355   : > { %645 = vsyncadd (!%p550_p2), %s475_s18, 4294967280  ;;  %p19_p3 = scmp.ge.s32.totalorder %s734_s8, 4   ;;  %s838_s26 = smov %s652_s27 }
 0x356   : > { %s839_s27 = smov %s656_s28  ;;  %s840_s28 = smov %s745_s11 }
 0x357   : > { %s841_s29 = smov %s734_s8  ;;  %21 = sbr.rel (!%p19_p3) target bundleno = 6 (0x6), region = 83 }
 0x35e   :  { %479 = vsyncpa [#allocation4], 1 }
 0x35f   :  { %481 = vsyncpa [#allocation4 + $0x1], 1 }

// kernel: _lambda_.10
= control target key start
LH: loop header
LB: loop body
LE: loop exit
PB: predicated region body
PF: predicated region fallthrough
CT: control target
= control target key end

     0   :  { %s949_s21 = smov 0   ;;  %s1031_s0 = inlined_call_operand.vmem [shape: bf16[2,4,16], index: 0, kind: input, shape index: {}]   ;;  %s1032_s1 = inlined_call_operand.vmem [shape: bf16[2,2,4,8], index: 1, kind: input, shape index: {}]   ;;  %s1033_s2 = inlined_call_operand.vmem [shape: bf16[16,16], index: 2, kind: input, shape index: {}]   ;;  %s1034_s3 = inlined_call_operand.vmem [shape: f32[1,16], index: 3, kind: input, shape index: {}, may-alias: {3,5,9,11}]   ;;  %s1035_s4 = inlined_call_operand.vmem [shape: f32[1,16], index: 4, kind: input, shape index: {}, may-alias: {4,10}]   ;;  %s1036_s5 = inlined_call_operand.vmem [shape: f32[1,16], index: 5, kind: input, shape index: {}, may-alias: {3,5,9,11}]   ;;  %s1037_s6 = inlined_call_operand.vmem [shape: bf16[16,64], index: 6, kind: input, shape index: {}]   ;;  %s1038_s7 = inlined_call_operand.vmem [shape: f32[1,64], index: 7, kind: input, shape index: {}]   ;;  %s1039_s8 = inlined_call_operand.vmem [shape: bf16[64,16], index: 8, kind: input, shape index: {}]   ;;  %s1040_s9 = inlined_call_operand.vmem [shape: f32[1,16], index: 9, kind: input, shape index: {}, may-alias: {3,5,9,11}]   ;;  %s1041_s10 = inlined_call_operand.vmem [shape: f32[1,16], index: 10, kind: input, shape index: {}, may-alias: {4,10}]   ;;  %s1042_s11 = inlined_call_operand.vmem [shape: f32[1,16], index: 11, kind: input, shape index: {}, may-alias: {3,5,9,11}]   ;;  %s1043_s12 = inlined_call_operand.vmem [shape: bf16[2,4,16], index: 12, kind: output, shape index: {}]  }
   0x1 LB: > { %s788_s22 = sadd.s32 4294967295, %s879_s21   ;;  %p792_p0 = scmp.ge.s32.totalorder %s879_s21, 1  ;;  %s879_s21 = sphi %s949_s21, %s22_s21  }
   0x2   : > { %p371_p1 = scmp.lt.s32.totalorder %s879_s21, 3 }
   0x4   : > { %p372_p2 = pnand %p792_p0, %p371_p1 }
   0x5   : > { %p416_p3 = scmp.lt.s32.totalorder (!%p372_p2), %s788_s22, 1  ;;  %v861_v0 = vld [vmem:[%s1033_s2] sm:$0xff] (!%p372_p2)   ;;  %v881_v1 = vmov (!%p372_p2), 0.0   ;;  %vm882_vm0 = vmmov (!%p372_p2), 0   ;;  %s883_s29 = smov (!%p372_p2), 8   ;;  %vm444_vm1 = vcmask (!%p372_p2), 64512  }
   0x6   : > { %375 = sbr.rel (%p372_p2) target bundleno = 1439 (0x59f), region = 68  ;;  %826 = vmatprep.subr.bf16.mxu1 (!%p372_p2), %v881_v1  ;;  %838 = vmatprep.subr.bf16.mxu0 (!%p372_p2), %v881_v1  ;;  %vm463_vm2 = vcmask (!%p372_p2), 130048   ;;  %v798_v7 = vld [vmem:[%s1034_s3] ss:$0 sm:$0xff] (!%p372_p2)  ;;  %vm509_vm3 = vcmask (!%p372_p2), 125952   ;;  %v864_v33 = vld [vmem:[%s1039_s8 + $0x8] sm:$0xff] (!%p372_p2)  }
   0x7   : > { %827 = vmatpush3.bf16.msra.mxu1 (!%p372_p2), %v861_v0  ;;  %828 = vmatprep.mubr.msk.bf16.mxu1 (!%p372_p2), %vm882_vm0, %v881_v1  ;;  %v862_v21 = vld [vmem:[%s1037_s6] sm:$0xff] (!%p372_p2)   ;;  %v865_v34 = vld [vmem:[%s1039_s8 + $0x10] sm:$0xff] (!%p372_p2)   ;;  %v866_v35 = vld [vmem:[%s1039_s8 + $0x18] sm:$0xff] (!%p372_p2)   ;;  %vm646_vm4 = vcmask (!%p372_p2), 523264   ;;  %vm721_vm5 = vcmask (!%p372_p2), 123904  }
   0x8   : > { %832 = vmatprep.subr.bf16.mxu1 (!%p372_p2), %v881_v1  ;;  %846 = vmatprep.mubr.msk.bf16.mxu0 (!%p372_p2), %vm882_vm0, %v881_v1  ;;  %v801_v26 = vld [vmem:[%s1035_s4] ss:$0 sm:$0xff] (!%p372_p2) }
   0x9   : > { %v802_v28 = vld [vmem:[%s1036_s5] ss:$0 sm:$0xff] (!%p372_p2) }
   0xa   : > { %v863_v32 = vld [vmem:[%s1039_s8] sm:$0xff] (!%p372_p2)  }
   0xb   : > { %839 = vmatpush3.bf16.msra.mxu0 (!%p372_p2), %v863_v32  ;;  %v803_v36 = vld [vmem:[%s1038_s7] ss:$0 sm:$0xff] (!%p372_p2) }
   0xc   : > { %840 = vmatprep.subr.bf16.mxu0 (!%p372_p2), %v881_v1  ;;  %v806_v52 = vld [vmem:[%s1040_s9] ss:$0 sm:$0xff] (!%p372_p2) }
   0xd   : > { %s1045_s22 = smov (!%p416_p3, %s788_s22), 1 }
   0xe   : > { %s816_s25 = sshll.u32 %s1045_s22, 2  ;;  %s793_s30 = sshll.u32 %s1045_s22, 1 }
   0xf   : > { %s424_s28 = scalar_lea.vmem %s1032_s1, %s816_s25  ;;  %s419_s15 = scalar_lea.vmem %s1031_s0, %s793_s30  ;;  %841 = vmatpush3.bf16.msra.mxu0 %v864_v33 }
  0x10   : > { %v797_v2 = vld.sshfl [vmem:[%s424_s28 + $0x2] sm:$0x3 pattern:$0x76325410]  ;;  %v432_v3 = vld [vmem:[%s424_s28] sm:$0x3]  ;;  %842 = vmatprep.subr.bf16.mxu0 %v881_v1 }
  0x11   : > { %442 = vrot.lane.b32.xlu0 %v797_v2, %s883_s29  ;;  %v430_v6 = vld [vmem:[%s419_s15] sm:$0x3]  ;;  %s428_s29 = scalar_lea.vmem %s1043_s12, %s793_s30 }
  0x12   : > { %v431_v8 = vunpack.c.l.bf16 %v430_v6 }
  0x13   : > { %843 = vmatpush3.bf16.msra.mxu0 %v865_v34 }
  0x14   : > { %844 = vmatprep.subr.bf16.mxu0 %v881_v1 }
  0x17   : > { %845 = vmatpush3.bf16.msra.mxu0 %v866_v35 }
  0x83   : > { %v443_v4 = vpop.permute.xlu0 %442 }
  0x84   : > { %v447_v5 = vsel %vm444_vm1, %v432_v3, %v443_v4 }
  0x85   : > { %829 = vmatmul.mubr.msk.bf16.vlgmr.msra.gmra.mrb[0].mxu1 %vm463_vm2, %v447_v5  ;;  %v812_v5 = vld [vmem:[%s1041_s10] ss:$0 sm:$0xff] }
  0x86   : > { %834 = vmatprep.mubr.msk.bf16.mxu1 %vm882_vm0, %v881_v1  ;;  %833 = vmatpush3.bf16.msra.mxu1 %v862_v21 }
 0x158   : > { %v500_v9 = vpop.f32.mrb[0].mxu1 }
 0x159   : > { %v501_v10 = vadd.f32 %v798_v7, %v500_v9  ;;  %v830_v11 = vpop.f32.mrb[1].mxu1  ;;  %v813_v7 = vld [vmem:[%s1042_s11] ss:$0 sm:$0xff] }
 0x15a   : > { %v503_v12 = vpop.f32.mrb[2].mxu1 }
 0x15b   : > { %v831_v13 = vpop.f32.mrb[3].mxu1  ;;  %v506_v14 = vadd.f32 %v501_v10, %v431_v8 }
 0x15d   : > { %v510_v15 = vsel %vm509_vm3, %v506_v14, 0.0 }
 0x15e   : > { %511 = vadd.xlane.f32.xlu0 %v510_v15 }
 0x1eb   : > { %v512_v16 = vpop.xlane.xlu0 %511 }
 0x1ec   : > { %v514_v17 = vmul.f32 0.0625, %v512_v16 }
 0x1ee   : > { %v515_v18 = vsub.f32 %v506_v14, %v514_v17 }
 0x1f0   : > { %v516_v19 = vmul.f32 %v515_v18, %v515_v18 }
 0x1f2   : > { %v517_v20 = vsel %vm509_vm3, %v516_v19, 0.0 }
 0x1f3   : > { %518 = vadd.xlane.f32.xlu1 %v517_v20 }
 0x280   : > { %v519_v22 = vpop.xlane.xlu1 %518 }
 0x281   : > { %v520_v23 = vmul.f32 0.0625, %v519_v22 }
 0x283   : > { %v521_v24 = vadd.f32 1e-05, %v520_v23 }
 0x285   : > { %867 = vrsqrt.f32 %v521_v24 }
 0x28f   : > { %v868_v25 = vpop.eup %867 }
 0x290   : > { %v523_v27 = vmul.f32 %v868_v25, %v515_v18 }
 0x292   : > { %v530_v29 = vmul.f32 %v801_v26, %v523_v27 }
 0x294   : > { %v537_v30 = vadd.f32 %v802_v28, %v530_v29 }
 0x296   : > { %v538_v31 = vpack.c.bf16 %v537_v30, %v537_v30 }
 0x298   : > { %835 = vmatmul.mubr.msk.bf16.vlgmr.msra.gmra.mrb[4].mxu1 %vm463_vm2, %v538_v31 }
 0x36b   : > { %v591_v37 = vpop.f32.mrb[4].mxu1 }
 0x36c   : > { %v592_v38 = vadd.f32 %v803_v36, %v591_v37  ;;  %v836_v39 = vpop.f32.mrb[5].mxu1 }
 0x36d   : > { %v594_v40 = vpop.f32.mrb[6].mxu1 }
 0x36e   : > { %v597_v41 = vmul.f32 %v592_v38, %v592_v38  ;;  %v837_v42 = vpop.f32.mrb[7].mxu1 }
 0x370   : > { %v598_v43 = vmul.f32 %v597_v41, %v592_v38 }
 0x372   : > { %v599_v44 = vmul.f32 0.044715, %v598_v43 }
 0x374   : > { %v600_v45 = vadd.f32 %v599_v44, %v592_v38 }
 0x376   : > { %v601_v46 = vmul.f32 0.7978846, %v600_v45 }
 0x378   : > { %869 = vtanh.f32 %v601_v46 }
 0x382   : > { %v870_v47 = vpop.eup %869 }
 0x383   : > { %v603_v48 = vadd.f32 1.0, %v870_v47 }
 0x385   : > { %v604_v49 = vmul.f32 0.5, %v603_v48 }
 0x387   : > { %v605_v50 = vmul.f32 %v604_v49, %v592_v38 }
 0x389   : > { %v606_v51 = vpack.c.bf16 %v605_v50, %v605_v50 }
 0x38b   : > { %847 = vmatmul.mubr.msk.bf16.vlgmr.msra.gmra.mrb[0].mxu0 %vm646_vm4, %v606_v51 }
 0x45e   : > { %v684_v53 = vpop.f32.mrb[0].mxu0 }
 0x45f   : > { %v685_v54 = vadd.f32 %v806_v52, %v684_v53  ;;  %v848_v55 = vpop.f32.mrb[1].mxu0 }
 0x460   : > { %v687_v56 = vpop.f32.mrb[2].mxu0 }
 0x461   : > { %v849_v57 = vpop.f32.mrb[3].mxu0  ;;  %v690_v58 = vadd.f32 %v685_v54, %v537_v30 }
 0x463   : > { %v693_v59 = vsel %vm509_vm3, %v690_v58, 0.0 }
 0x464   : > { %694 = vadd.xlane.f32.xlu1 %v693_v59 }
 0x4f1   : > { %v695_v60 = vpop.xlane.xlu1 %694 }
 0x4f2   : > { %v696_v61 = vmul.f32 0.0625, %v695_v60 }
 0x4f4   : > { %v697_v62 = vsub.f32 %v690_v58, %v696_v61 }
 0x4f6   : > { %v698_v63 = vmul.f32 %v697_v62, %v697_v62 }
 0x4f8   : > { %v699_v0 = vsel %vm509_vm3, %v698_v63, 0.0 }
 0x4f9   : > { %700 = vadd.xlane.f32.xlu1 %v699_v0 }
 0x586   : > { %v701_v1 = vpop.xlane.xlu1 %700 }
 0x587   : > { %v702_v2 = vmul.f32 0.0625, %v701_v1 }
 0x589   : > { %v703_v3 = vadd.f32 1e-05, %v702_v2 }
 0x58b   : > { %871 = vrsqrt.f32 %v703_v3 }
 0x595   : > { %v872_v4 = vpop.eup %871 }
 0x596   : > { %v705_v6 = vmul.f32 %v872_v4, %v697_v62 }
 0x598   : > { %v712_v8 = vmul.f32 %v812_v5, %v705_v6 }
 0x59a   : > { %v719_v9 = vadd.f32 %v813_v7, %v712_v8 }
 0x59c   : > { %v720_v10 = vpack.c.bf16 %v719_v9, %v719_v9 }
 0x59e   : > { %722 = vst.msk [vmem:[%s428_s29] sm:$0x3] %vm721_vm5, %v720_v10 }
 0x59f PF: > { %s22_s21 = sadd.s32 1, %s879_s21  }
 0x5a0   : > { %p19_p4 = scmp.ge.s32.totalorder %s22_s21, 4  }
 0x5a2   :  { %21 = sbr.rel (!%p19_p4) target bundleno = 1 (0x1), region = 101 }

</bundles_post_ra>
